<compile_context>
chip_gen: v5e
topology: v5e:2x2
jax: 0.10.0
libtpu: 0.0.40
codegen_flags: <defaults>
</compile_context>

<pallas_src>
import jax
import jax.numpy as jnp
from jax.experimental import pallas as pl
from jax.experimental.pallas import tpu as pltpu

# ---- scaled-down config (real biomed_roberta_base: 12 layers, 768 hidden, 12 heads) ----
VOCAB = 100
HIDDEN = 128            # lane-dense (multiple of 128)
N_HEADS = 4
HEAD_DIM = HIDDEN // N_HEADS
N_LAYERS = 2
INTERMEDIATE = 256      # lane-dense
MAX_POS = 32
TYPE_VOCAB = 1          # RoBERTa has type_vocab_size = 1
NUM_LABELS = 30
CLS_PAD = 128           # classifier lane dim padded 30 -> 128
LN_EPS = 1e-5
PAD_IDX = 1             # RoBERTa padding_idx
NEG_INF = -1e9


# ----------------------------- in-kernel helpers -----------------------------

def _ln(x, g, b):
    # LayerNorm over the last axis; all VPU/EUP math stays f32 (v5e-safe).
    mean = jnp.mean(x, axis=-1, keepdims=True)
    var = jnp.mean((x - mean) ** 2, axis=-1, keepdims=True)
    return (x - mean) * jax.lax.rsqrt(var + LN_EPS) * g + b


# ----------------------------- fused Pallas kernel -----------------------------

def _roberta_kernel(x_emb_ref, mask_ref, emb_g_ref, emb_b_ref,
                    wqkv_ref, bqkv_ref, wo_ref, bo_ref, ln1_g_ref, ln1_b_ref,
                    wi_ref, bi_ref, wf_ref, bf_ref, ln2_g_ref, ln2_b_ref,
                    wp_ref, bp_ref, wc_ref, bc_ref,
                    logits_ref, x_scr):
    """grid = (batch_chunk, layer).  Activation [M, H] stays resident in x_scr (VMEM)
    across the layer axis; embeddings are read only at l == 0 and logits are written only
    at l == N_LAYERS - 1."""
    l = pl.program_id(1)
    M, H = x_scr.shape                      # M = (B / B_CHUNKS) * S
    S = mask_ref.shape[-1]
    BC = M // S
    bf16 = jnp.bfloat16

    # ---- layer 0: embedding LayerNorm seeds the resident activation ----
    @pl.when(l == 0)
    def _():
        x_scr[...] = _ln(x_emb_ref[...], emb_g_ref[...], emb_b_ref[...])

    x = x_scr[...]                          # [M, H] f32
    xb = x.astype(bf16)

    # ---- fused QKV projection: one MXU push with N = 3*H, M = full chunk ----
    qkv = jnp.dot(xb, wqkv_ref[...], preferred_element_type=jnp.float32) + bqkv_ref[...]
    q = qkv[:, :HIDDEN].astype(bf16)
    k = qkv[:, HIDDEN:2 * HIDDEN].astype(bf16)
    v = qkv[:, 2 * HIDDEN:].astype(bf16)

    # ---- multi-head attention: per head, two dot_generals batched over the batch dim ----
    mask = mask_ref[...]                    # [BC, 1, S] additive (0 / -1e9), f32
    scale = 1.0 / (HEAD_DIM ** 0.5)
    ctx_heads = []
    for h in range(N_HEADS):
        lo, hi = h * HEAD_DIM, (h + 1) * HEAD_DIM
        qh = q[:, lo:hi].reshape(BC, S, HEAD_DIM)
        kh = k[:, lo:hi].reshape(BC, S, HEAD_DIM)
        vh = v[:, lo:hi].reshape(BC, S, HEAD_DIM)
        s = jnp.einsum('bqd,bkd->bqk', qh, kh,
                       preferred_element_type=jnp.float32) * scale + mask
        s = s - jnp.max(s, axis=-1, keepdims=True)
        p = jnp.exp(s)
        p = p * pl.reciprocal(jnp.sum(p, axis=-1, keepdims=True), approx=True)
        ctx_h = jnp.einsum('bqk,bkd->bqd', p.astype(bf16), vh,
                           preferred_element_type=jnp.float32)
        ctx_heads.append(ctx_h.reshape(M, HEAD_DIM))
    ctx = jnp.concatenate(ctx_heads, axis=-1)          # [M, H] f32

    # ---- output projection + residual + LayerNorm ----
    attn = jnp.dot(ctx.astype(bf16), wo_ref[...],
                   preferred_element_type=jnp.float32) + bo_ref[...]
    x1 = _ln(attn + x, ln1_g_ref[...], ln1_b_ref[...])

    # ---- FFN + residual + LayerNorm ----
    # TODO(synk): HF RoBERTa uses erf-based gelu; the tanh approximation lowers cleanly on EUP.
    hmid = jnp.dot(x1.astype(bf16), wi_ref[...],
                   preferred_element_type=jnp.float32) + bi_ref[...]
    hmid = jax.nn.gelu(hmid, approximate=True)
    ff = jnp.dot(hmid.astype(bf16), wf_ref[...],
                 preferred_element_type=jnp.float32) + bf_ref[...]
    x2 = _ln(ff + x1, ln2_g_ref[...], ln2_b_ref[...])

    x_scr[...] = x2                                     # carry to next layer

    # ---- last layer: pooler(tanh) + [Dropout(0.3) = identity at inference] + classifier ----
    @pl.when(l == pl.num_programs(1) - 1)
    def _():
        cls = x2.reshape(BC, S, H)[:, 0, :]             # CLS rows of this chunk, [BC, H]
        pooled = jnp.tanh(jnp.dot(cls.astype(bf16), wp_ref[...],
                                  preferred_element_type=jnp.float32) + bp_ref[...])
        logits = jnp.dot(pooled.astype(bf16), wc_ref[...],
                         preferred_element_type=jnp.float32) + bc_ref[...]
        logits_ref[...] = logits.astype(logits_ref.dtype)


# ----------------------------- wrapper -----------------------------

def roberta_class_forward(params, ids, mask, token_type_ids):
    """Mirrors RoBERTaClass.forward: encoder -> pooler_output -> Dropout(0.3) -> Linear(H, 30)."""
    B, S = ids.shape

    # Embedding gathers are JAX glue (no clean Pallas gather at this scale).
    pos_ids = (jnp.cumsum(mask, axis=1) * mask + PAD_IDX).astype(jnp.int32)
    emb = (jnp.take(params["word_emb"], ids, axis=0)
           + jnp.take(params["pos_emb"], pos_ids, axis=0)
           + jnp.take(params["type_emb"], token_type_ids, axis=0)).astype(jnp.float32)
    x_emb = emb.reshape(B * S, HIDDEN)

    # Additive key mask (f32): 0 where attended, -1e9 where padded.
    # TODO(synk): at production S pad the mask lane-dense (multiple of 128) or move to SMEM.
    add_mask = ((1.0 - mask.astype(jnp.float32)) * NEG_INF).reshape(B, 1, S)

    # >=2 batch chunks on the leading "parallel" axis keeps both v7x TensorCores busy;
    # each chunk flattens (B // n_chunks) * S rows into the matmul M dimension.
    n_chunks = 2 if (B >= 2 and B % 2 == 0) else 1
    bc = B // n_chunks
    M = bc * S

    def _wblk(shape):   # per-layer stacked param: leading layer dim, indexed by l
        return pl.BlockSpec((None,) + shape, lambda c, l: (l,) + (0,) * len(shape))

    def _cblk(shape):   # layer-invariant whole-array param: constant block index (no re-DMA)
        return pl.BlockSpec(shape, lambda c, l: (0,) * len(shape))

    in_specs = [
        pl.BlockSpec((M, HIDDEN), lambda c, l: (c, 0)),           # embeddings (read at l==0)
        pl.BlockSpec((bc, 1, S), lambda c, l: (c, 0, 0)),         # additive mask
        _cblk((1, HIDDEN)), _cblk((1, HIDDEN)),                   # embedding LN gamma / beta
        _wblk((HIDDEN, 3 * HIDDEN)), _wblk((1, 3 * HIDDEN)),      # fused QKV
        _wblk((HIDDEN, HIDDEN)), _wblk((1, HIDDEN)),              # attn output proj
        _wblk((1, HIDDEN)), _wblk((1, HIDDEN)),                   # LN1
        _wblk((HIDDEN, INTERMEDIATE)), _wblk((1, INTERMEDIATE)),  # FFN in
        _wblk((INTERMEDIATE, HIDDEN)), _wblk((1, HIDDEN)),        # FFN out
        _wblk((1, HIDDEN)), _wblk((1, HIDDEN)),                   # LN2
        _cblk((HIDDEN, HIDDEN)), _cblk((1, HIDDEN)),              # pooler
        _cblk((HIDDEN, CLS_PAD)), _cblk((1, CLS_PAD)),            # classifier (padded 30->128)
    ]
    out_spec = pl.BlockSpec((None, bc, CLS_PAD), lambda c, l: (c, 0, 0))

    logits_pad = pl.pallas_call(
        _roberta_kernel,
        out_shape=jax.ShapeDtypeStruct((n_chunks, bc, CLS_PAD), jnp.float32),
        grid_spec=pltpu.PrefetchScalarGridSpec(
            num_scalar_prefetch=0,
            grid=(n_chunks, N_LAYERS),
            in_specs=in_specs,
            out_specs=out_spec,
            scratch_shapes=[pltpu.VMEM((M, HIDDEN), jnp.float32)],  # resident activation
        ),
        compiler_params=pltpu.CompilerParams(
            dimension_semantics=("parallel", "arbitrary"),
            vmem_limit_bytes=32 * 1024 * 1024,
        ),
    )(x_emb, add_mask,
      params["emb_ln_g"], params["emb_ln_b"],
      params["wqkv"], params["bqkv"], params["wo"], params["bo"],
      params["ln1_g"], params["ln1_b"],
      params["wi"], params["bi"], params["wf"], params["bf"],
      params["ln2_g"], params["ln2_b"],
      params["pool_w"], params["pool_b"],
      params["cls_w_pad"], params["cls_b_pad"])

    return logits_pad.reshape(B, CLS_PAD)[:, :NUM_LABELS]           # [B, 30]


# ----------------------------- parameters -----------------------------

def init_params(key):
    def nrm(k, shape):
        return jax.random.normal(k, shape, jnp.float32) * 0.02

    keys = iter(jax.random.split(key, 5 + 4 * N_LAYERS))
    word_emb = nrm(next(keys), (VOCAB, HIDDEN)).at[PAD_IDX].set(0.0)
    pos_emb = nrm(next(keys), (MAX_POS, HIDDEN)).at[PAD_IDX].set(0.0)
    type_emb = nrm(next(keys), (TYPE_VOCAB, HIDDEN))
    pool_w = nrm(next(keys), (HIDDEN, HIDDEN))
    cls_w = nrm(next(keys), (HIDDEN, NUM_LABELS))                   # l3: Linear(768, 30)

    wqkv, wo, wi, wf = [], [], [], []
    for _ in range(N_LAYERS):
        wqkv.append(nrm(next(keys), (HIDDEN, 3 * HIDDEN)))          # torch Linear weights
        wo.append(nrm(next(keys), (HIDDEN, HIDDEN)))                # transposed & stacked
        wi.append(nrm(next(keys), (HIDDEN, INTERMEDIATE)))
        wf.append(nrm(next(keys), (INTERMEDIATE, HIDDEN)))

    def stack_bf16(lst):                                            # MXU operands in bf16
        return jnp.stack(lst).astype(jnp.bfloat16)

    zeros = lambda s: jnp.zeros(s, jnp.float32)
    ones = lambda s: jnp.ones(s, jnp.float32)

    return {
        "word_emb": word_emb, "pos_emb": pos_emb, "type_emb": type_emb,
        "emb_ln_g": ones((1, HIDDEN)), "emb_ln_b": zeros((1, HIDDEN)),
        "wqkv": stack_bf16(wqkv), "bqkv": zeros((N_LAYERS, 1, 3 * HIDDEN)),
        "wo": stack_bf16(wo), "bo": zeros((N_LAYERS, 1, HIDDEN)),
        "ln1_g": ones((N_LAYERS, 1, HIDDEN)), "ln1_b": zeros((N_LAYERS, 1, HIDDEN)),
        "wi": stack_bf16(wi), "bi": zeros((N_LAYERS, 1, INTERMEDIATE)),
        "wf": stack_bf16(wf), "bf": zeros((N_LAYERS, 1, HIDDEN)),
        "ln2_g": ones((N_LAYERS, 1, HIDDEN)), "ln2_b": zeros((N_LAYERS, 1, HIDDEN)),
        "pool_w": pool_w.astype(jnp.bfloat16), "pool_b": zeros((1, HIDDEN)),
        "cls_w_pad": (jnp.zeros((HIDDEN, CLS_PAD), jnp.float32)
                      .at[:, :NUM_LABELS].set(cls_w).astype(jnp.bfloat16)),
        "cls_b_pad": zeros((1, CLS_PAD)),
    }


# ----------------------------- main -----------------------------

if __name__ == "__main__":
    key = jax.random.PRNGKey(0)
    pkey, ikey = jax.random.split(key)

    params = init_params(pkey)

    B, S = 2, 8
    ids = jax.random.randint(ikey, (B, S), 0, VOCAB, dtype=jnp.int32)
    mask = jnp.ones((B, S), dtype=jnp.int32)
    token_type_ids = jnp.zeros((B, S), dtype=jnp.int32)

    fwd = jax.jit(roberta_class_forward)
    logits = fwd(params, ids, mask, token_type_ids)
    jax.block_until_ready(logits)

    assert logits.shape == (B, NUM_LABELS) and logits.dtype == jnp.float32
    print("KERNEL_OK")
</pallas_src>

<mosaic_0001>
module attributes {stable_mosaic.version = 11 : i64} {
  func.func @_roberta_kernel(%arg0: i32, %arg1: i32, %arg2: memref<8x128xf32, #tpu.memory_space<vmem>>, %arg3: memref<1x1x8xf32, #tpu.memory_space<vmem>>, %arg4: memref<1x128xf32, #tpu.memory_space<vmem>>, %arg5: memref<1x128xf32, #tpu.memory_space<vmem>>, %arg6: memref<1x128x384xbf16, #tpu.memory_space<vmem>>, %arg7: memref<1x1x384xf32, #tpu.memory_space<vmem>>, %arg8: memref<1x128x128xbf16, #tpu.memory_space<vmem>>, %arg9: memref<1x1x128xf32, #tpu.memory_space<vmem>>, %arg10: memref<1x1x128xf32, #tpu.memory_space<vmem>>, %arg11: memref<1x1x128xf32, #tpu.memory_space<vmem>>, %arg12: memref<1x128x256xbf16, #tpu.memory_space<vmem>>, %arg13: memref<1x1x256xf32, #tpu.memory_space<vmem>>, %arg14: memref<1x256x128xbf16, #tpu.memory_space<vmem>>, %arg15: memref<1x1x128xf32, #tpu.memory_space<vmem>>, %arg16: memref<1x1x128xf32, #tpu.memory_space<vmem>>, %arg17: memref<1x1x128xf32, #tpu.memory_space<vmem>>, %arg18: memref<128x128xbf16, #tpu.memory_space<vmem>>, %arg19: memref<1x128xf32, #tpu.memory_space<vmem>>, %arg20: memref<128x128xbf16, #tpu.memory_space<vmem>>, %arg21: memref<1x128xf32, #tpu.memory_space<vmem>>, %arg22: memref<1x1x128xf32, #tpu.memory_space<vmem>>, %arg23: memref<8x128xf32, #tpu.memory_space<vmem>>) attributes {dimension_semantics = [#tpu.dimension_semantics<parallel>, #tpu.dimension_semantics<arbitrary>], iteration_bounds = array<i64: 2, 2>, scalar_prefetch = 0 : i64, scratch_operands = 1 : i64, tpu.core_type = #tpu.core_type<tc>, window_params = [{transform_indices = @transform_0, window_bounds = array<i64: 8, 128>}, {transform_indices = @transform_1, window_bounds = array<i64: 1, 1, 8>}, {pipeline_mode = #tpu.pipeline_mode<synchronous>, transform_indices = @transform_2, window_bounds = array<i64: 1, 128>}, {pipeline_mode = #tpu.pipeline_mode<synchronous>, transform_indices = @transform_3, window_bounds = array<i64: 1, 128>}, {transform_indices = @transform_4, window_bounds = array<i64: 1, 128, 384>}, {transform_indices = @transform_5, window_bounds = array<i64: 1, 1, 384>}, {transform_indices = @transform_6, window_bounds = array<i64: 1, 128, 128>}, {transform_indices = @transform_7, window_bounds = array<i64: 1, 1, 128>}, {transform_indices = @transform_8, window_bounds = array<i64: 1, 1, 128>}, {transform_indices = @transform_9, window_bounds = array<i64: 1, 1, 128>}, {transform_indices = @transform_10, window_bounds = array<i64: 1, 128, 256>}, {transform_indices = @transform_11, window_bounds = array<i64: 1, 1, 256>}, {transform_indices = @transform_12, window_bounds = array<i64: 1, 256, 128>}, {transform_indices = @transform_13, window_bounds = array<i64: 1, 1, 128>}, {transform_indices = @transform_14, window_bounds = array<i64: 1, 1, 128>}, {transform_indices = @transform_15, window_bounds = array<i64: 1, 1, 128>}, {pipeline_mode = #tpu.pipeline_mode<synchronous>, transform_indices = @transform_16, window_bounds = array<i64: 128, 128>}, {pipeline_mode = #tpu.pipeline_mode<synchronous>, transform_indices = @transform_17, window_bounds = array<i64: 1, 128>}, {pipeline_mode = #tpu.pipeline_mode<synchronous>, transform_indices = @transform_18, window_bounds = array<i64: 128, 128>}, {pipeline_mode = #tpu.pipeline_mode<synchronous>, transform_indices = @transform_19, window_bounds = array<i64: 1, 128>}, {transform_indices = @transform_20, window_bounds = array<i64: 1, 1, 128>}]} {
    %c0_i32 = arith.constant 0 : i32
    %0 = arith.cmpi eq, %arg1, %c0_i32 : i32
    %1 = arith.extui %0 : i1 to i32
    %c0_i32_0 = arith.constant 0 : i32
    %2 = arith.cmpi ne, %1, %c0_i32_0 : i32
    scf.if %2 {
      %c0_81 = arith.constant 0 : index
      %c0_82 = arith.constant 0 : index
      %211 = vector.load %arg2[%c0_81, %c0_82] : memref<8x128xf32, #tpu.memory_space<vmem>>, vector<8x128xf32>
      %c0_83 = arith.constant 0 : index
      %c0_84 = arith.constant 0 : index
      %212 = vector.load %arg4[%c0_83, %c0_84] : memref<1x128xf32, #tpu.memory_space<vmem>>, vector<1x128xf32>
      %c0_85 = arith.constant 0 : index
      %c0_86 = arith.constant 0 : index
      %213 = vector.load %arg5[%c0_85, %c0_86] : memref<1x128xf32, #tpu.memory_space<vmem>>, vector<1x128xf32>
      %cst_87 = arith.constant dense<0.000000e+00> : vector<8xf32>
      %214 = vector.multi_reduction <add>, %211, %cst_87 [1] : vector<8x128xf32> to vector<8xf32>
      %215 = vector.shape_cast %214 : vector<8xf32> to vector<8x1xf32>
      %cst_88 = arith.constant 1.280000e+02 : f32
      %216 = vector.broadcast %cst_88 : f32 to vector<8x1xf32>
      %217 = arith.divf %215, %216 : vector<8x1xf32>
      %218 = vector.broadcast %217 : vector<8x1xf32> to vector<8x128xf32>
      %219 = arith.subf %211, %218 : vector<8x128xf32>
      %220 = arith.mulf %219, %219 : vector<8x128xf32>
      %cst_89 = arith.constant dense<0.000000e+00> : vector<8xf32>
      %221 = vector.multi_reduction <add>, %220, %cst_89 [1] : vector<8x128xf32> to vector<8xf32>
      %222 = vector.shape_cast %221 : vector<8xf32> to vector<8x1xf32>
      %cst_90 = arith.constant 1.280000e+02 : f32
      %223 = vector.broadcast %cst_90 : f32 to vector<8x1xf32>
      %224 = arith.divf %222, %223 : vector<8x1xf32>
      %225 = vector.broadcast %217 : vector<8x1xf32> to vector<8x128xf32>
      %226 = arith.subf %211, %225 : vector<8x128xf32>
      %cst_91 = arith.constant 9.99999974E-6 : f32
      %227 = vector.broadcast %cst_91 : f32 to vector<8x1xf32>
      %228 = arith.addf %224, %227 : vector<8x1xf32>
      %229 = math.rsqrt %228 : vector<8x1xf32>
      %230 = vector.broadcast %229 : vector<8x1xf32> to vector<8x128xf32>
      %231 = arith.mulf %226, %230 : vector<8x128xf32>
      %232 = vector.broadcast %212 : vector<1x128xf32> to vector<8x128xf32>
      %233 = arith.mulf %231, %232 : vector<8x128xf32>
      %234 = vector.broadcast %213 : vector<1x128xf32> to vector<8x128xf32>
      %235 = arith.addf %233, %234 : vector<8x128xf32>
      %c0_92 = arith.constant 0 : index
      %c0_93 = arith.constant 0 : index
      %236 = vector.load %arg23[%c0_92, %c0_93] : memref<8x128xf32, #tpu.memory_space<vmem>>, vector<8x128xf32>
      tpu.vector_store %arg23[%c0_92, %c0_93], %235 {strides = array<i32>} : memref<8x128xf32, #tpu.memory_space<vmem>>, vector<8x128xf32>,
    } else {
    }
    %c0 = arith.constant 0 : index
    %c0_1 = arith.constant 0 : index
    %3 = vector.load %arg23[%c0, %c0_1] : memref<8x128xf32, #tpu.memory_space<vmem>>, vector<8x128xf32>
    %4 = arith.truncf %3 : vector<8x128xf32> to vector<8x128xbf16>
    %c0_2 = arith.constant 0 : index
    %c0_3 = arith.constant 0 : index
    %c0_4 = arith.constant 0 : index
    %5 = vector.load %arg6[%c0_2, %c0_3, %c0_4] : memref<1x128x384xbf16, #tpu.memory_space<vmem>>, vector<1x128x384xbf16>
    %6 = vector.shape_cast %5 : vector<1x128x384xbf16> to vector<128x384xbf16>
    %cst = arith.constant dense<0.000000e+00> : vector<8x384xf32>
    %7 = tpu.matmul %4, %6, %cst {dimension_numbers = #tpu.dot_dimension_numbers<[1], [0], [0], [1], [0, 0, 1, 1], [], []>} : vector<8x128xbf16>, vector<128x384xbf16>, vector<8x384xf32> -> vector<8x384xf32>
    %c0_5 = arith.constant 0 : index
    %c0_6 = arith.constant 0 : index
    %c0_7 = arith.constant 0 : index
    %8 = vector.load %arg7[%c0_5, %c0_6, %c0_7] : memref<1x1x384xf32, #tpu.memory_space<vmem>>, vector<1x1x384xf32>
    %9 = vector.shape_cast %8 : vector<1x1x384xf32> to vector<1x384xf32>
    %10 = vector.broadcast %9 : vector<1x384xf32> to vector<8x384xf32>
    %11 = arith.addf %7, %10 : vector<8x384xf32>
    %12 = vector.extract_strided_slice %11 {offsets = [0, 0], sizes = [8, 128], strides = [1, 1]} : vector<8x384xf32> to vector<8x128xf32>
    %13 = arith.truncf %12 : vector<8x128xf32> to vector<8x128xbf16>
    %14 = vector.extract_strided_slice %11 {offsets = [0, 128], sizes = [8, 128], strides = [1, 1]} : vector<8x384xf32> to vector<8x128xf32>
    %15 = arith.truncf %14 : vector<8x128xf32> to vector<8x128xbf16>
    %16 = vector.extract_strided_slice %11 {offsets = [0, 256], sizes = [8, 128], strides = [1, 1]} : vector<8x384xf32> to vector<8x128xf32>
    %17 = arith.truncf %16 : vector<8x128xf32> to vector<8x128xbf16>
    %c0_8 = arith.constant 0 : index
    %c0_9 = arith.constant 0 : index
    %c0_10 = arith.constant 0 : index
    %18 = vector.load %arg3[%c0_8, %c0_9, %c0_10] : memref<1x1x8xf32, #tpu.memory_space<vmem>>, vector<1x1x8xf32>
    %19 = vector.extract_strided_slice %13 {offsets = [0, 0], sizes = [8, 32], strides = [1, 1]} : vector<8x128xbf16> to vector<8x32xbf16>
    %20 = vector.shape_cast %19 : vector<8x32xbf16> to vector<1x8x32xbf16>
    %21 = vector.extract_strided_slice %15 {offsets = [0, 0], sizes = [8, 32], strides = [1, 1]} : vector<8x128xbf16> to vector<8x32xbf16>
    %22 = vector.shape_cast %21 : vector<8x32xbf16> to vector<1x8x32xbf16>
    %23 = vector.extract_strided_slice %17 {offsets = [0, 0], sizes = [8, 32], strides = [1, 1]} : vector<8x128xbf16> to vector<8x32xbf16>
    %24 = vector.shape_cast %23 : vector<8x32xbf16> to vector<1x8x32xbf16>
    "tpu.trace_start"() <{level = 10 : i32, message = "bqd,bkd->bqk"}> : () -> ()
    %cst_11 = arith.constant dense<0.000000e+00> : vector<1x8x8xf32>
    %25 = tpu.matmul %20, %22, %cst_11 {dimension_numbers = #tpu.dot_dimension_numbers<[2], [2], [1], [1], [0, 0, 0, 1, 1, 1], [0], [0]>} : vector<1x8x32xbf16>, vector<1x8x32xbf16>, vector<1x8x8xf32> -> vector<1x8x8xf32>
    "tpu.trace_stop"() : () -> ()
    %cst_12 = arith.constant 0.176776692 : f32
    %26 = vector.broadcast %cst_12 : f32 to vector<1x8x8xf32>
    %27 = arith.mulf %25, %26 : vector<1x8x8xf32>
    %28 = vector.broadcast %18 : vector<1x1x8xf32> to vector<1x8x8xf32>
    %29 = arith.addf %27, %28 : vector<1x8x8xf32>
    %cst_13 = arith.constant dense<0xFF800000> : vector<1x8xf32>
    %30 = vector.multi_reduction <maximumf>, %29, %cst_13 [2] : vector<1x8x8xf32> to vector<1x8xf32>
    %31 = vector.shape_cast %30 : vector<1x8xf32> to vector<1x8x1xf32>
    %32 = vector.broadcast %31 : vector<1x8x1xf32> to vector<1x8x8xf32>
    %33 = arith.subf %29, %32 : vector<1x8x8xf32>
    %34 = math.exp %33 : vector<1x8x8xf32>
    %cst_14 = arith.constant dense<0.000000e+00> : vector<1x8xf32>
    %35 = vector.multi_reduction <add>, %34, %cst_14 [2] : vector<1x8x8xf32> to vector<1x8xf32>
    %36 = vector.shape_cast %35 : vector<1x8xf32> to vector<1x8x1xf32>
    %37 = tpu.reciprocal %36 {approx = true} : vector<1x8x1xf32> -> vector<1x8x1xf32>
    %38 = vector.broadcast %37 : vector<1x8x1xf32> to vector<1x8x8xf32>
    %39 = arith.mulf %34, %38 : vector<1x8x8xf32>
    %40 = arith.truncf %39 : vector<1x8x8xf32> to vector<1x8x8xbf16>
    "tpu.trace_start"() <{level = 10 : i32, message = "bqk,bkd->bqd"}> : () -> ()
    %cst_15 = arith.constant dense<0.000000e+00> : vector<1x8x32xf32>
    %41 = tpu.matmul %40, %24, %cst_15 {dimension_numbers = #tpu.dot_dimension_numbers<[2], [1], [1], [2], [0, 0, 0, 1, 1, 2], [0], [0]>} : vector<1x8x8xbf16>, vector<1x8x32xbf16>, vector<1x8x32xf32> -> vector<1x8x32xf32>
    "tpu.trace_stop"() : () -> ()
    %42 = vector.shape_cast %41 : vector<1x8x32xf32> to vector<8x32xf32>
    %43 = vector.extract_strided_slice %13 {offsets = [0, 32], sizes = [8, 32], strides = [1, 1]} : vector<8x128xbf16> to vector<8x32xbf16>
    %44 = vector.shape_cast %43 : vector<8x32xbf16> to vector<1x8x32xbf16>
    %45 = vector.extract_strided_slice %15 {offsets = [0, 32], sizes = [8, 32], strides = [1, 1]} : vector<8x128xbf16> to vector<8x32xbf16>
    %46 = vector.shape_cast %45 : vector<8x32xbf16> to vector<1x8x32xbf16>
    %47 = vector.extract_strided_slice %17 {offsets = [0, 32], sizes = [8, 32], strides = [1, 1]} : vector<8x128xbf16> to vector<8x32xbf16>
    %48 = vector.shape_cast %47 : vector<8x32xbf16> to vector<1x8x32xbf16>
    "tpu.trace_start"() <{level = 10 : i32, message = "bqd,bkd->bqk"}> : () -> ()
    %cst_16 = arith.constant dense<0.000000e+00> : vector<1x8x8xf32>
    %49 = tpu.matmul %44, %46, %cst_16 {dimension_numbers = #tpu.dot_dimension_numbers<[2], [2], [1], [1], [0, 0, 0, 1, 1, 1], [0], [0]>} : vector<1x8x32xbf16>, vector<1x8x32xbf16>, vector<1x8x8xf32> -> vector<1x8x8xf32>
    "tpu.trace_stop"() : () -> ()
    %cst_17 = arith.constant 0.176776692 : f32
    %50 = vector.broadcast %cst_17 : f32 to vector<1x8x8xf32>
    %51 = arith.mulf %49, %50 : vector<1x8x8xf32>
    %52 = vector.broadcast %18 : vector<1x1x8xf32> to vector<1x8x8xf32>
    %53 = arith.addf %51, %52 : vector<1x8x8xf32>
    %cst_18 = arith.constant dense<0xFF800000> : vector<1x8xf32>
    %54 = vector.multi_reduction <maximumf>, %53, %cst_18 [2] : vector<1x8x8xf32> to vector<1x8xf32>
    %55 = vector.shape_cast %54 : vector<1x8xf32> to vector<1x8x1xf32>
    %56 = vector.broadcast %55 : vector<1x8x1xf32> to vector<1x8x8xf32>
    %57 = arith.subf %53, %56 : vector<1x8x8xf32>
    %58 = math.exp %57 : vector<1x8x8xf32>
    %cst_19 = arith.constant dense<0.000000e+00> : vector<1x8xf32>
    %59 = vector.multi_reduction <add>, %58, %cst_19 [2] : vector<1x8x8xf32> to vector<1x8xf32>
    %60 = vector.shape_cast %59 : vector<1x8xf32> to vector<1x8x1xf32>
    %61 = tpu.reciprocal %60 {approx = true} : vector<1x8x1xf32> -> vector<1x8x1xf32>
    %62 = vector.broadcast %61 : vector<1x8x1xf32> to vector<1x8x8xf32>
    %63 = arith.mulf %58, %62 : vector<1x8x8xf32>
    %64 = arith.truncf %63 : vector<1x8x8xf32> to vector<1x8x8xbf16>
    "tpu.trace_start"() <{level = 10 : i32, message = "bqk,bkd->bqd"}> : () -> ()
    %cst_20 = arith.constant dense<0.000000e+00> : vector<1x8x32xf32>
    %65 = tpu.matmul %64, %48, %cst_20 {dimension_numbers = #tpu.dot_dimension_numbers<[2], [1], [1], [2], [0, 0, 0, 1, 1, 2], [0], [0]>} : vector<1x8x8xbf16>, vector<1x8x32xbf16>, vector<1x8x32xf32> -> vector<1x8x32xf32>
    "tpu.trace_stop"() : () -> ()
    %66 = vector.shape_cast %65 : vector<1x8x32xf32> to vector<8x32xf32>
    %67 = vector.extract_strided_slice %13 {offsets = [0, 64], sizes = [8, 32], strides = [1, 1]} : vector<8x128xbf16> to vector<8x32xbf16>
    %68 = vector.shape_cast %67 : vector<8x32xbf16> to vector<1x8x32xbf16>
    %69 = vector.extract_strided_slice %15 {offsets = [0, 64], sizes = [8, 32], strides = [1, 1]} : vector<8x128xbf16> to vector<8x32xbf16>
    %70 = vector.shape_cast %69 : vector<8x32xbf16> to vector<1x8x32xbf16>
    %71 = vector.extract_strided_slice %17 {offsets = [0, 64], sizes = [8, 32], strides = [1, 1]} : vector<8x128xbf16> to vector<8x32xbf16>
    %72 = vector.shape_cast %71 : vector<8x32xbf16> to vector<1x8x32xbf16>
    "tpu.trace_start"() <{level = 10 : i32, message = "bqd,bkd->bqk"}> : () -> ()
    %cst_21 = arith.constant dense<0.000000e+00> : vector<1x8x8xf32>
    %73 = tpu.matmul %68, %70, %cst_21 {dimension_numbers = #tpu.dot_dimension_numbers<[2], [2], [1], [1], [0, 0, 0, 1, 1, 1], [0], [0]>} : vector<1x8x32xbf16>, vector<1x8x32xbf16>, vector<1x8x8xf32> -> vector<1x8x8xf32>
    "tpu.trace_stop"() : () -> ()
    %cst_22 = arith.constant 0.176776692 : f32
    %74 = vector.broadcast %cst_22 : f32 to vector<1x8x8xf32>
    %75 = arith.mulf %73, %74 : vector<1x8x8xf32>
    %76 = vector.broadcast %18 : vector<1x1x8xf32> to vector<1x8x8xf32>
    %77 = arith.addf %75, %76 : vector<1x8x8xf32>
    %cst_23 = arith.constant dense<0xFF800000> : vector<1x8xf32>
    %78 = vector.multi_reduction <maximumf>, %77, %cst_23 [2] : vector<1x8x8xf32> to vector<1x8xf32>
    %79 = vector.shape_cast %78 : vector<1x8xf32> to vector<1x8x1xf32>
    %80 = vector.broadcast %79 : vector<1x8x1xf32> to vector<1x8x8xf32>
    %81 = arith.subf %77, %80 : vector<1x8x8xf32>
    %82 = math.exp %81 : vector<1x8x8xf32>
    %cst_24 = arith.constant dense<0.000000e+00> : vector<1x8xf32>
    %83 = vector.multi_reduction <add>, %82, %cst_24 [2] : vector<1x8x8xf32> to vector<1x8xf32>
    %84 = vector.shape_cast %83 : vector<1x8xf32> to vector<1x8x1xf32>
    %85 = tpu.reciprocal %84 {approx = true} : vector<1x8x1xf32> -> vector<1x8x1xf32>
    %86 = vector.broadcast %85 : vector<1x8x1xf32> to vector<1x8x8xf32>
    %87 = arith.mulf %82, %86 : vector<1x8x8xf32>
    %88 = arith.truncf %87 : vector<1x8x8xf32> to vector<1x8x8xbf16>
    "tpu.trace_start"() <{level = 10 : i32, message = "bqk,bkd->bqd"}> : () -> ()
    %cst_25 = arith.constant dense<0.000000e+00> : vector<1x8x32xf32>
    %89 = tpu.matmul %88, %72, %cst_25 {dimension_numbers = #tpu.dot_dimension_numbers<[2], [1], [1], [2], [0, 0, 0, 1, 1, 2], [0], [0]>} : vector<1x8x8xbf16>, vector<1x8x32xbf16>, vector<1x8x32xf32> -> vector<1x8x32xf32>
    "tpu.trace_stop"() : () -> ()
    %90 = vector.shape_cast %89 : vector<1x8x32xf32> to vector<8x32xf32>
    %91 = vector.extract_strided_slice %13 {offsets = [0, 96], sizes = [8, 32], strides = [1, 1]} : vector<8x128xbf16> to vector<8x32xbf16>
    %92 = vector.shape_cast %91 : vector<8x32xbf16> to vector<1x8x32xbf16>
    %93 = vector.extract_strided_slice %15 {offsets = [0, 96], sizes = [8, 32], strides = [1, 1]} : vector<8x128xbf16> to vector<8x32xbf16>
    %94 = vector.shape_cast %93 : vector<8x32xbf16> to vector<1x8x32xbf16>
    %95 = vector.extract_strided_slice %17 {offsets = [0, 96], sizes = [8, 32], strides = [1, 1]} : vector<8x128xbf16> to vector<8x32xbf16>
    %96 = vector.shape_cast %95 : vector<8x32xbf16> to vector<1x8x32xbf16>
    "tpu.trace_start"() <{level = 10 : i32, message = "bqd,bkd->bqk"}> : () -> ()
    %cst_26 = arith.constant dense<0.000000e+00> : vector<1x8x8xf32>
    %97 = tpu.matmul %92, %94, %cst_26 {dimension_numbers = #tpu.dot_dimension_numbers<[2], [2], [1], [1], [0, 0, 0, 1, 1, 1], [0], [0]>} : vector<1x8x32xbf16>, vector<1x8x32xbf16>, vector<1x8x8xf32> -> vector<1x8x8xf32>
    "tpu.trace_stop"() : () -> ()
    %cst_27 = arith.constant 0.176776692 : f32
    %98 = vector.broadcast %cst_27 : f32 to vector<1x8x8xf32>
    %99 = arith.mulf %97, %98 : vector<1x8x8xf32>
    %100 = vector.broadcast %18 : vector<1x1x8xf32> to vector<1x8x8xf32>
    %101 = arith.addf %99, %100 : vector<1x8x8xf32>
    %cst_28 = arith.constant dense<0xFF800000> : vector<1x8xf32>
    %102 = vector.multi_reduction <maximumf>, %101, %cst_28 [2] : vector<1x8x8xf32> to vector<1x8xf32>
    %103 = vector.shape_cast %102 : vector<1x8xf32> to vector<1x8x1xf32>
    %104 = vector.broadcast %103 : vector<1x8x1xf32> to vector<1x8x8xf32>
    %105 = arith.subf %101, %104 : vector<1x8x8xf32>
    %106 = math.exp %105 : vector<1x8x8xf32>
    %cst_29 = arith.constant dense<0.000000e+00> : vector<1x8xf32>
    %107 = vector.multi_reduction <add>, %106, %cst_29 [2] : vector<1x8x8xf32> to vector<1x8xf32>
    %108 = vector.shape_cast %107 : vector<1x8xf32> to vector<1x8x1xf32>
    %109 = tpu.reciprocal %108 {approx = true} : vector<1x8x1xf32> -> vector<1x8x1xf32>
    %110 = vector.broadcast %109 : vector<1x8x1xf32> to vector<1x8x8xf32>
    %111 = arith.mulf %106, %110 : vector<1x8x8xf32>
    %112 = arith.truncf %111 : vector<1x8x8xf32> to vector<1x8x8xbf16>
    "tpu.trace_start"() <{level = 10 : i32, message = "bqk,bkd->bqd"}> : () -> ()
    %cst_30 = arith.constant dense<0.000000e+00> : vector<1x8x32xf32>
    %113 = tpu.matmul %112, %96, %cst_30 {dimension_numbers = #tpu.dot_dimension_numbers<[2], [1], [1], [2], [0, 0, 0, 1, 1, 2], [0], [0]>} : vector<1x8x8xbf16>, vector<1x8x32xbf16>, vector<1x8x32xf32> -> vector<1x8x32xf32>
    "tpu.trace_stop"() : () -> ()
    %114 = vector.shape_cast %113 : vector<1x8x32xf32> to vector<8x32xf32>
    %115 = tpu.concatenate %42, %66, %90, %114 in 1 : vector<8x32xf32>, vector<8x32xf32>, vector<8x32xf32>, vector<8x32xf32> -> vector<8x128xf32>
    %116 = arith.truncf %115 : vector<8x128xf32> to vector<8x128xbf16>
    %c0_31 = arith.constant 0 : index
    %c0_32 = arith.constant 0 : index
    %c0_33 = arith.constant 0 : index
    %117 = vector.load %arg8[%c0_31, %c0_32, %c0_33] : memref<1x128x128xbf16, #tpu.memory_space<vmem>>, vector<1x128x128xbf16>
    %118 = vector.shape_cast %117 : vector<1x128x128xbf16> to vector<128x128xbf16>
    %cst_34 = arith.constant dense<0.000000e+00> : vector<8x128xf32>
    %119 = tpu.matmul %116, %118, %cst_34 {dimension_numbers = #tpu.dot_dimension_numbers<[1], [0], [0], [1], [0, 0, 1, 1], [], []>} : vector<8x128xbf16>, vector<128x128xbf16>, vector<8x128xf32> -> vector<8x128xf32>
    %c0_35 = arith.constant 0 : index
    %c0_36 = arith.constant 0 : index
    %c0_37 = arith.constant 0 : index
    %120 = vector.load %arg9[%c0_35, %c0_36, %c0_37] : memref<1x1x128xf32, #tpu.memory_space<vmem>>, vector<1x1x128xf32>
    %121 = vector.shape_cast %120 : vector<1x1x128xf32> to vector<1x128xf32>
    %122 = vector.broadcast %121 : vector<1x128xf32> to vector<8x128xf32>
    %123 = arith.addf %119, %122 : vector<8x128xf32>
    %124 = arith.addf %123, %3 : vector<8x128xf32>
    %c0_38 = arith.constant 0 : index
    %c0_39 = arith.constant 0 : index
    %c0_40 = arith.constant 0 : index
    %125 = vector.load %arg10[%c0_38, %c0_39, %c0_40] : memref<1x1x128xf32, #tpu.memory_space<vmem>>, vector<1x1x128xf32>
    %126 = vector.shape_cast %125 : vector<1x1x128xf32> to vector<1x128xf32>
    %c0_41 = arith.constant 0 : index
    %c0_42 = arith.constant 0 : index
    %c0_43 = arith.constant 0 : index
    %127 = vector.load %arg11[%c0_41, %c0_42, %c0_43] : memref<1x1x128xf32, #tpu.memory_space<vmem>>, vector<1x1x128xf32>
    %128 = vector.shape_cast %127 : vector<1x1x128xf32> to vector<1x128xf32>
    %cst_44 = arith.constant dense<0.000000e+00> : vector<8xf32>
    %129 = vector.multi_reduction <add>, %124, %cst_44 [1] : vector<8x128xf32> to vector<8xf32>
    %130 = vector.shape_cast %129 : vector<8xf32> to vector<8x1xf32>
    %cst_45 = arith.constant 1.280000e+02 : f32
    %131 = vector.broadcast %cst_45 : f32 to vector<8x1xf32>
    %132 = arith.divf %130, %131 : vector<8x1xf32>
    %133 = vector.broadcast %132 : vector<8x1xf32> to vector<8x128xf32>
    %134 = arith.subf %124, %133 : vector<8x128xf32>
    %135 = arith.mulf %134, %134 : vector<8x128xf32>
    %cst_46 = arith.constant dense<0.000000e+00> : vector<8xf32>
    %136 = vector.multi_reduction <add>, %135, %cst_46 [1] : vector<8x128xf32> to vector<8xf32>
    %137 = vector.shape_cast %136 : vector<8xf32> to vector<8x1xf32>
    %cst_47 = arith.constant 1.280000e+02 : f32
    %138 = vector.broadcast %cst_47 : f32 to vector<8x1xf32>
    %139 = arith.divf %137, %138 : vector<8x1xf32>
    %140 = vector.broadcast %132 : vector<8x1xf32> to vector<8x128xf32>
    %141 = arith.subf %124, %140 : vector<8x128xf32>
    %cst_48 = arith.constant 9.99999974E-6 : f32
    %142 = vector.broadcast %cst_48 : f32 to vector<8x1xf32>
    %143 = arith.addf %139, %142 : vector<8x1xf32>
    %144 = math.rsqrt %143 : vector<8x1xf32>
    %145 = vector.broadcast %144 : vector<8x1xf32> to vector<8x128xf32>
    %146 = arith.mulf %141, %145 : vector<8x128xf32>
    %147 = vector.broadcast %126 : vector<1x128xf32> to vector<8x128xf32>
    %148 = arith.mulf %146, %147 : vector<8x128xf32>
    %149 = vector.broadcast %128 : vector<1x128xf32> to vector<8x128xf32>
    %150 = arith.addf %148, %149 : vector<8x128xf32>
    %151 = arith.truncf %150 : vector<8x128xf32> to vector<8x128xbf16>
    %c0_49 = arith.constant 0 : index
    %c0_50 = arith.constant 0 : index
    %c0_51 = arith.constant 0 : index
    %152 = vector.load %arg12[%c0_49, %c0_50, %c0_51] : memref<1x128x256xbf16, #tpu.memory_space<vmem>>, vector<1x128x256xbf16>
    %153 = vector.shape_cast %152 : vector<1x128x256xbf16> to vector<128x256xbf16>
    %cst_52 = arith.constant dense<0.000000e+00> : vector<8x256xf32>
    %154 = tpu.matmul %151, %153, %cst_52 {dimension_numbers = #tpu.dot_dimension_numbers<[1], [0], [0], [1], [0, 0, 1, 1], [], []>} : vector<8x128xbf16>, vector<128x256xbf16>, vector<8x256xf32> -> vector<8x256xf32>
    %c0_53 = arith.constant 0 : index
    %c0_54 = arith.constant 0 : index
    %c0_55 = arith.constant 0 : index
    %155 = vector.load %arg13[%c0_53, %c0_54, %c0_55] : memref<1x1x256xf32, #tpu.memory_space<vmem>>, vector<1x1x256xf32>
    %156 = vector.shape_cast %155 : vector<1x1x256xf32> to vector<1x256xf32>
    %157 = vector.broadcast %156 : vector<1x256xf32> to vector<8x256xf32>
    %158 = arith.addf %154, %157 : vector<8x256xf32>
    %159 = arith.mulf %158, %158 : vector<8x256xf32>
    %160 = arith.mulf %158, %159 : vector<8x256xf32>
    %cst_56 = arith.constant 4.471500e-02 : f32
    %161 = vector.broadcast %cst_56 : f32 to vector<8x256xf32>
    %162 = arith.mulf %161, %160 : vector<8x256xf32>
    %163 = arith.addf %158, %162 : vector<8x256xf32>
    %cst_57 = arith.constant 0.797884583 : f32
    %164 = vector.broadcast %cst_57 : f32 to vector<8x256xf32>
    %165 = arith.mulf %164, %163 : vector<8x256xf32>
    %166 = math.tanh %165 : vector<8x256xf32>
    %cst_58 = arith.constant 1.000000e+00 : f32
    %167 = vector.broadcast %cst_58 : f32 to vector<8x256xf32>
    %168 = arith.addf %167, %166 : vector<8x256xf32>
    %cst_59 = arith.constant 5.000000e-01 : f32
    %169 = vector.broadcast %cst_59 : f32 to vector<8x256xf32>
    %170 = arith.mulf %169, %168 : vector<8x256xf32>
    %171 = arith.mulf %158, %170 : vector<8x256xf32>
    %172 = arith.truncf %171 : vector<8x256xf32> to vector<8x256xbf16>
    %c0_60 = arith.constant 0 : index
    %c0_61 = arith.constant 0 : index
    %c0_62 = arith.constant 0 : index
    %173 = vector.load %arg14[%c0_60, %c0_61, %c0_62] : memref<1x256x128xbf16, #tpu.memory_space<vmem>>, vector<1x256x128xbf16>
    %174 = vector.shape_cast %173 : vector<1x256x128xbf16> to vector<256x128xbf16>
    %cst_63 = arith.constant dense<0.000000e+00> : vector<8x128xf32>
    %175 = tpu.matmul %172, %174, %cst_63 {dimension_numbers = #tpu.dot_dimension_numbers<[1], [0], [0], [1], [0, 0, 1, 1], [], []>} : vector<8x256xbf16>, vector<256x128xbf16>, vector<8x128xf32> -> vector<8x128xf32>
    %c0_64 = arith.constant 0 : index
    %c0_65 = arith.constant 0 : index
    %c0_66 = arith.constant 0 : index
    %176 = vector.load %arg15[%c0_64, %c0_65, %c0_66] : memref<1x1x128xf32, #tpu.memory_space<vmem>>, vector<1x1x128xf32>
    %177 = vector.shape_cast %176 : vector<1x1x128xf32> to vector<1x128xf32>
    %178 = vector.broadcast %177 : vector<1x128xf32> to vector<8x128xf32>
    %179 = arith.addf %175, %178 : vector<8x128xf32>
    %180 = arith.addf %179, %150 : vector<8x128xf32>
    %c0_67 = arith.constant 0 : index
    %c0_68 = arith.constant 0 : index
    %c0_69 = arith.constant 0 : index
    %181 = vector.load %arg16[%c0_67, %c0_68, %c0_69] : memref<1x1x128xf32, #tpu.memory_space<vmem>>, vector<1x1x128xf32>
    %182 = vector.shape_cast %181 : vector<1x1x128xf32> to vector<1x128xf32>
    %c0_70 = arith.constant 0 : index
    %c0_71 = arith.constant 0 : index
    %c0_72 = arith.constant 0 : index
    %183 = vector.load %arg17[%c0_70, %c0_71, %c0_72] : memref<1x1x128xf32, #tpu.memory_space<vmem>>, vector<1x1x128xf32>
    %184 = vector.shape_cast %183 : vector<1x1x128xf32> to vector<1x128xf32>
    %cst_73 = arith.constant dense<0.000000e+00> : vector<8xf32>
    %185 = vector.multi_reduction <add>, %180, %cst_73 [1] : vector<8x128xf32> to vector<8xf32>
    %186 = vector.shape_cast %185 : vector<8xf32> to vector<8x1xf32>
    %cst_74 = arith.constant 1.280000e+02 : f32
    %187 = vector.broadcast %cst_74 : f32 to vector<8x1xf32>
    %188 = arith.divf %186, %187 : vector<8x1xf32>
    %189 = vector.broadcast %188 : vector<8x1xf32> to vector<8x128xf32>
    %190 = arith.subf %180, %189 : vector<8x128xf32>
    %191 = arith.mulf %190, %190 : vector<8x128xf32>
    %cst_75 = arith.constant dense<0.000000e+00> : vector<8xf32>
    %192 = vector.multi_reduction <add>, %191, %cst_75 [1] : vector<8x128xf32> to vector<8xf32>
    %193 = vector.shape_cast %192 : vector<8xf32> to vector<8x1xf32>
    %cst_76 = arith.constant 1.280000e+02 : f32
    %194 = vector.broadcast %cst_76 : f32 to vector<8x1xf32>
    %195 = arith.divf %193, %194 : vector<8x1xf32>
    %196 = vector.broadcast %188 : vector<8x1xf32> to vector<8x128xf32>
    %197 = arith.subf %180, %196 : vector<8x128xf32>
    %cst_77 = arith.constant 9.99999974E-6 : f32
    %198 = vector.broadcast %cst_77 : f32 to vector<8x1xf32>
    %199 = arith.addf %195, %198 : vector<8x1xf32>
    %200 = math.rsqrt %199 : vector<8x1xf32>
    %201 = vector.broadcast %200 : vector<8x1xf32> to vector<8x128xf32>
    %202 = arith.mulf %197, %201 : vector<8x128xf32>
    %203 = vector.broadcast %182 : vector<1x128xf32> to vector<8x128xf32>
    %204 = arith.mulf %202, %203 : vector<8x128xf32>
    %205 = vector.broadcast %184 : vector<1x128xf32> to vector<8x128xf32>
    %206 = arith.addf %204, %205 : vector<8x128xf32>
    %c0_78 = arith.constant 0 : index
    %c0_79 = arith.constant 0 : index
    %207 = vector.load %arg23[%c0_78, %c0_79] : memref<8x128xf32, #tpu.memory_space<vmem>>, vector<8x128xf32>
    tpu.vector_store %arg23[%c0_78, %c0_79], %206 {strides = array<i32>} : memref<8x128xf32, #tpu.memory_space<vmem>>, vector<8x128xf32>,
    %c1_i32 = arith.constant 1 : i32
    %208 = arith.cmpi eq, %arg1, %c1_i32 : i32
    %209 = arith.extui %208 : i1 to i32
    %c0_i32_80 = arith.constant 0 : i32
    %210 = arith.cmpi ne, %209, %c0_i32_80 : i32
    scf.if %210 {
      %211 = vector.shape_cast %206 : vector<8x128xf32> to vector<1x8x128xf32>
      %212 = vector.extract_strided_slice %211 {offsets = [0, 0, 0], sizes = [1, 1, 128], strides = [1, 1, 1]} : vector<1x8x128xf32> to vector<1x1x128xf32>
      %213 = vector.shape_cast %212 : vector<1x1x128xf32> to vector<1x128xf32>
      %214 = arith.truncf %213 : vector<1x128xf32> to vector<1x128xbf16>
      %c0_81 = arith.constant 0 : index
      %c0_82 = arith.constant 0 : index
      %215 = vector.load %arg18[%c0_81, %c0_82] : memref<128x128xbf16, #tpu.memory_space<vmem>>, vector<128x128xbf16>
      %cst_83 = arith.constant dense<0.000000e+00> : vector<1x128xf32>
      %216 = tpu.matmul %214, %215, %cst_83 {dimension_numbers = #tpu.dot_dimension_numbers<[1], [0], [0], [1], [0, 0, 1, 1], [], []>} : vector<1x128xbf16>, vector<128x128xbf16>, vector<1x128xf32> -> vector<1x128xf32>
      %c0_84 = arith.constant 0 : index
      %c0_85 = arith.constant 0 : index
      %217 = vector.load %arg19[%c0_84, %c0_85] : memref<1x128xf32, #tpu.memory_space<vmem>>, vector<1x128xf32>
      %218 = arith.addf %216, %217 : vector<1x128xf32>
      %219 = math.tanh %218 : vector<1x128xf32>
      %220 = arith.truncf %219 : vector<1x128xf32> to vector<1x128xbf16>
      %c0_86 = arith.constant 0 : index
      %c0_87 = arith.constant 0 : index
      %221 = vector.load %arg20[%c0_86, %c0_87] : memref<128x128xbf16, #tpu.memory_space<vmem>>, vector<128x128xbf16>
      %cst_88 = arith.constant dense<0.000000e+00> : vector<1x128xf32>
      %222 = tpu.matmul %220, %221, %cst_88 {dimension_numbers = #tpu.dot_dimension_numbers<[1], [0], [0], [1], [0, 0, 1, 1], [], []>} : vector<1x128xbf16>, vector<128x128xbf16>, vector<1x128xf32> -> vector<1x128xf32>
      %c0_89 = arith.constant 0 : index
      %c0_90 = arith.constant 0 : index
      %223 = vector.load %arg21[%c0_89, %c0_90] : memref<1x128xf32, #tpu.memory_space<vmem>>, vector<1x128xf32>
      %224 = arith.addf %222, %223 : vector<1x128xf32>
      %c0_91 = arith.constant 0 : index
      %c0_92 = arith.constant 0 : index
      %c0_93 = arith.constant 0 : index
      %225 = vector.load %arg22[%c0_91, %c0_92, %c0_93] : memref<1x1x128xf32, #tpu.memory_space<vmem>>, vector<1x1x128xf32>
      %226 = vector.shape_cast %225 : vector<1x1x128xf32> to vector<1x128xf32>
      %227 = vector.shape_cast %224 : vector<1x128xf32> to vector<1x1x128xf32>
      tpu.vector_store %arg22[%c0_91, %c0_92, %c0_93], %227 {strides = array<i32>} : memref<1x1x128xf32, #tpu.memory_space<vmem>>, vector<1x1x128xf32>,
    } else {
    }
    return
  }
  func.func @transform_0(%arg0: i32, %arg1: i32) -> (i32, i32) {
    %c0_i32 = arith.constant 0 : i32
    %c0_i32_0 = arith.constant 0 : i32
    return %arg0, %c0_i32 : i32, i32
  }
  func.func @transform_1(%arg0: i32, %arg1: i32) -> (i32, i32, i32) {
    %c0_i32 = arith.constant 0 : i32
    %c0_i32_0 = arith.constant 0 : i32
    %c0_i32_1 = arith.constant 0 : i32
    return %arg0, %c0_i32, %c0_i32_0 : i32, i32, i32
  }
  func.func @transform_2(%arg0: i32, %arg1: i32) -> (i32, i32) {
    %c0_i32 = arith.constant 0 : i32
    %c0_i32_0 = arith.constant 0 : i32
    %c0_i32_1 = arith.constant 0 : i32
    return %c0_i32, %c0_i32_0 : i32, i32
  }
  func.func @transform_3(%arg0: i32, %arg1: i32) -> (i32, i32) {
    %c0_i32 = arith.constant 0 : i32
    %c0_i32_0 = arith.constant 0 : i32
    %c0_i32_1 = arith.constant 0 : i32
    return %c0_i32, %c0_i32_0 : i32, i32
  }
  func.func @transform_4(%arg0: i32, %arg1: i32) -> (i32, i32, i32) {
    %c0_i32 = arith.constant 0 : i32
    %c0_i32_0 = arith.constant 0 : i32
    %c0_i32_1 = arith.constant 0 : i32
    return %arg1, %c0_i32, %c0_i32_0 : i32, i32, i32
  }
  func.func @transform_5(%arg0: i32, %arg1: i32) -> (i32, i32, i32) {
    %c0_i32 = arith.constant 0 : i32
    %c0_i32_0 = arith.constant 0 : i32
    %c0_i32_1 = arith.constant 0 : i32
    return %arg1, %c0_i32, %c0_i32_0 : i32, i32, i32
  }
  func.func @transform_6(%arg0: i32, %arg1: i32) -> (i32, i32, i32) {
    %c0_i32 = arith.constant 0 : i32
    %c0_i32_0 = arith.constant 0 : i32
    %c0_i32_1 = arith.constant 0 : i32
    return %arg1, %c0_i32, %c0_i32_0 : i32, i32, i32
  }
  func.func @transform_7(%arg0: i32, %arg1: i32) -> (i32, i32, i32) {
    %c0_i32 = arith.constant 0 : i32
    %c0_i32_0 = arith.constant 0 : i32
    %c0_i32_1 = arith.constant 0 : i32
    return %arg1, %c0_i32, %c0_i32_0 : i32, i32, i32
  }
  func.func @transform_8(%arg0: i32, %arg1: i32) -> (i32, i32, i32) {
    %c0_i32 = arith.constant 0 : i32
    %c0_i32_0 = arith.constant 0 : i32
    %c0_i32_1 = arith.constant 0 : i32
    return %arg1, %c0_i32, %c0_i32_0 : i32, i32, i32
  }
  func.func @transform_9(%arg0: i32, %arg1: i32) -> (i32, i32, i32) {
    %c0_i32 = arith.constant 0 : i32
    %c0_i32_0 = arith.constant 0 : i32
    %c0_i32_1 = arith.constant 0 : i32
    return %arg1, %c0_i32, %c0_i32_0 : i32, i32, i32
  }
  func.func @transform_10(%arg0: i32, %arg1: i32) -> (i32, i32, i32) {
    %c0_i32 = arith.constant 0 : i32
    %c0_i32_0 = arith.constant 0 : i32
    %c0_i32_1 = arith.constant 0 : i32
    return %arg1, %c0_i32, %c0_i32_0 : i32, i32, i32
  }
  func.func @transform_11(%arg0: i32, %arg1: i32) -> (i32, i32, i32) {
    %c0_i32 = arith.constant 0 : i32
    %c0_i32_0 = arith.constant 0 : i32
    %c0_i32_1 = arith.constant 0 : i32
    return %arg1, %c0_i32, %c0_i32_0 : i32, i32, i32
  }
  func.func @transform_12(%arg0: i32, %arg1: i32) -> (i32, i32, i32) {
    %c0_i32 = arith.constant 0 : i32
    %c0_i32_0 = arith.constant 0 : i32
    %c0_i32_1 = arith.constant 0 : i32
    return %arg1, %c0_i32, %c0_i32_0 : i32, i32, i32
  }
  func.func @transform_13(%arg0: i32, %arg1: i32) -> (i32, i32, i32) {
    %c0_i32 = arith.constant 0 : i32
    %c0_i32_0 = arith.constant 0 : i32
    %c0_i32_1 = arith.constant 0 : i32
    return %arg1, %c0_i32, %c0_i32_0 : i32, i32, i32
  }
  func.func @transform_14(%arg0: i32, %arg1: i32) -> (i32, i32, i32) {
    %c0_i32 = arith.constant 0 : i32
    %c0_i32_0 = arith.constant 0 : i32
    %c0_i32_1 = arith.constant 0 : i32
    return %arg1, %c0_i32, %c0_i32_0 : i32, i32, i32
  }
  func.func @transform_15(%arg0: i32, %arg1: i32) -> (i32, i32, i32) {
    %c0_i32 = arith.constant 0 : i32
    %c0_i32_0 = arith.constant 0 : i32
    %c0_i32_1 = arith.constant 0 : i32
    return %arg1, %c0_i32, %c0_i32_0 : i32, i32, i32
  }
  func.func @transform_16(%arg0: i32, %arg1: i32) -> (i32, i32) {
    %c0_i32 = arith.constant 0 : i32
    %c0_i32_0 = arith.constant 0 : i32
    %c0_i32_1 = arith.constant 0 : i32
    return %c0_i32, %c0_i32_0 : i32, i32
  }
  func.func @transform_17(%arg0: i32, %arg1: i32) -> (i32, i32) {
    %c0_i32 = arith.constant 0 : i32
    %c0_i32_0 = arith.constant 0 : i32
    %c0_i32_1 = arith.constant 0 : i32
    return %c0_i32, %c0_i32_0 : i32, i32
  }
  func.func @transform_18(%arg0: i32, %arg1: i32) -> (i32, i32) {
    %c0_i32 = arith.constant 0 : i32
    %c0_i32_0 = arith.constant 0 : i32
    %c0_i32_1 = arith.constant 0 : i32
    return %c0_i32, %c0_i32_0 : i32, i32
  }
  func.func @transform_19(%arg0: i32, %arg1: i32) -> (i32, i32) {
    %c0_i32 = arith.constant 0 : i32
    %c0_i32_0 = arith.constant 0 : i32
    %c0_i32_1 = arith.constant 0 : i32
    return %c0_i32, %c0_i32_0 : i32, i32
  }
  func.func @transform_20(%arg0: i32, %arg1: i32) -> (i32, i32, i32) {
    %c0_i32 = arith.constant 0 : i32
    %c0_i32_0 = arith.constant 0 : i32
    %c0_i32_1 = arith.constant 0 : i32
    return %arg0, %c0_i32, %c0_i32_0 : i32, i32, i32
  }
}

</mosaic_0001>

<bundles_post_ra>
// kernel: roberta_class_forward.1
= control target key start
LH: loop header
LB: loop body
LE: loop exit
PB: predicated region body
PF: predicated region fallthrough
CT: control target
= control target key end

     0   :  { %s3780_s0 = inlined_call_operand.vmem [shape: f32[16,128], index: 0, kind: input, shape index: {}]   ;;  %s3781_s1 = inlined_call_operand.vmem [shape: f32[2,1,8], index: 1, kind: input, shape index: {}]   ;;  %s3782_s2 = inlined_call_operand.vmem [shape: f32[1,128], index: 2, kind: input, shape index: {}]   ;;  %s3783_s3 = inlined_call_operand.vmem [shape: f32[1,128], index: 3, kind: input, shape index: {}]   ;;  %s3784_s4 = inlined_call_operand.hbm [shape: bf16[2,128,384], index: 4, kind: input, shape index: {}]   ;;  %s3785_s5 = inlined_call_operand.vmem [shape: f32[2,1,384], index: 5, kind: input, shape index: {}]   ;;  %s3786_s6 = inlined_call_operand.vmem [shape: bf16[2,128,128], index: 6, kind: input, shape index: {}]   ;;  %s3787_s7 = inlined_call_operand.vmem [shape: f32[2,1,128], index: 7, kind: input, shape index: {}]   ;;  %s3788_s8 = inlined_call_operand.vmem [shape: f32[2,1,128], index: 8, kind: input, shape index: {}]   ;;  %s3789_s9 = inlined_call_operand.vmem [shape: f32[2,1,128], index: 9, kind: input, shape index: {}]   ;;  %s3790_s10 = inlined_call_operand.hbm [shape: bf16[2,128,256], index: 10, kind: input, shape index: {}]   ;;  %s3791_s11 = inlined_call_operand.vmem [shape: f32[2,1,256], index: 11, kind: input, shape index: {}]   ;;  %s3792_s12 = inlined_call_operand.hbm [shape: bf16[2,256,128], index: 12, kind: input, shape index: {}]   ;;  %s3793_s13 = inlined_call_operand.vmem [shape: f32[2,1,128], index: 13, kind: input, shape index: {}]   ;;  %s3794_s14 = inlined_call_operand.vmem [shape: f32[2,1,128], index: 14, kind: input, shape index: {}]   ;;  %s3795_s15 = inlined_call_operand.vmem [shape: f32[2,1,128], index: 15, kind: input, shape index: {}]   ;;  %s3796_s16 = inlined_call_operand.vmem [shape: bf16[128,128], index: 16, kind: input, shape index: {}]   ;;  %s3797_s17 = inlined_call_operand.vmem [shape: f32[1,128], index: 17, kind: input, shape index: {}]   ;;  %s3798_s18 = inlined_call_operand.vmem [shape: bf16[128,128], index: 18, kind: input, shape index: {}]   ;;  %s3799_s19 = inlined_call_operand.vmem [shape: f32[1,128], index: 19, kind: input, shape index: {}]   ;;  %s3800_s20 = inlined_call_operand.hbm [shape: f32[2,1,128], index: 20, kind: output, shape index: {}]  }
   0x1   :  { %3818 = sst [smem:[#allocation27_spill]] %s3780_s0 }
   0x2   :  { %3819 = sst [smem:[#allocation28_spill]] %s3781_s1 }
   0x3   :  { %3820 = sst [smem:[#allocation29_spill]] %s3782_s2 }
   0x4   :  { %3821 = sst [smem:[#allocation30_spill]] %s3783_s3 }
   0x5   :  { %3822 = sst [smem:[#allocation31_spill]] %s3784_s4 }
   0x6   :  { %3823 = sst [smem:[#allocation32_spill]] %s3785_s5 }
   0x7   :  { %3824 = sst [smem:[#allocation33_spill]] %s3786_s6 }
   0x8   :  { %3825 = sst [smem:[#allocation34_spill]] %s3787_s7 }
   0x9   :  { %3826 = sst [smem:[#allocation35_spill]] %s3788_s8 }
   0xa   :  { %3827 = sst [smem:[#allocation36_spill]] %s3789_s9 }
   0xb   :  { %3828 = sst [smem:[#allocation37_spill]] %s3790_s10 }
   0xc   :  { %3829 = sst [smem:[#allocation38_spill]] %s3791_s11 }
   0xd   :  { %3830 = sst [smem:[#allocation39_spill]] %s3792_s12 }
   0xe   :  { %3831 = sst [smem:[#allocation40_spill]] %s3793_s13 }
   0xf   :  { %3832 = sst [smem:[#allocation41_spill]] %s3794_s14 }
  0x10   :  { %3833 = sst [smem:[#allocation42_spill]] %s3795_s15 }
  0x11   :  { %3834 = sst [smem:[#allocation43_spill]] %s3796_s16 }
  0x12   :  { %3835 = sst [smem:[#allocation44_spill]] %s3797_s17 }
  0x13   :  { %3836 = sst [smem:[#allocation45_spill]] %s3798_s18 }
  0x14   :  { %3837 = sst [smem:[#allocation46_spill]] %s3799_s19 }
  0x15   :  { %3838 = sst [smem:[#allocation47_spill]] %s3800_s20 }
  0x16   :  { %25 = vsyncpa [#allocation4], 0 }
  0x17   :  { %27 = vsyncpa [#allocation4 + $0x1], 0 }
  0x18   :  { %28 = vsyncpa [#allocation7], 0 }
  0x19   :  { %30 = vsyncpa [#allocation7 + $0x1], 0 }
  0x1a   :  { %31 = vsyncpa [#allocation5], 0 }
  0x1b   :  { %33 = vsyncpa [#allocation5 + $0x1], 0  ;;  %s3228_s1 = smov 0   ;;  %s3230_s22 = smov 0  }
  0x1c   :  { %s3232_s23 = smov 0   ;;  %s3234_s24 = smov 0  }
  0x1d   :  { %s3236_s2 = smov 0   ;;  %s3238_s25 = smov 0  }
  0x1e   :  { %s3240_s3 = smov 0   ;;  %s3242_s26 = smov 0  }
  0x1f   :  { %s3244_s27 = smov 0   ;;  %s3246_s28 = smov 0  }
  0x20   :  { %s3248_s4 = smov 0  }
  0x21 LB: > { %3839 = sst [smem:[#allocation13_spill]] %s3070_s1  ;;  %s3282_s29 = sadd.s32 4294967295, %s3110_s4   ;;  %s3110_s4 = sphi %s3248_s4, %s39_s4   ;;  %s3106_s28 = sphi %s3246_s28, %s3906_s28   ;;  %s3102_s27 = sphi %s3244_s27, %s3909_s27   ;;  %s3098_s26 = sphi %s3242_s26, %s3904_s26   ;;  %s3094_s3 = sphi %s3240_s3, %s3903_s3   ;;  %s3090_s25 = sphi %s3238_s25, %s3902_s25   ;;  %s3086_s2 = sphi %s3236_s2, %s3901_s2   ;;  %s3082_s24 = sphi %s3234_s24, %s3900_s24   ;;  %s3078_s23 = sphi %s3232_s23, %s3899_s23   ;;  %s3074_s22 = sphi %s3230_s22, %s3908_s22   ;;  %s3070_s1 = sphi %s3228_s1, %s3907_s1  }
  0x22   : > { %3840 = sst [smem:[#allocation14_spill]] %s3078_s23  ;;  %s2294_s30 = sadd.s32 4294967294, %s3110_s4  }
  0x23   : > { %3841 = sst [smem:[#allocation15_spill]] %s3086_s2  ;;  %s48_s0 = sadd.s32 1, %s3102_s27 }
  0x24   : > { %3842 = sst [smem:[#allocation16_spill]] %s3090_s25  ;;  %s51_s21 = sadd.s32 1, %s3106_s28 }
  0x25   : > { %3843 = sst [smem:[#allocation17_spill]] %s3098_s26  ;;  %p49_p0 = scmp.ge.s32.totalorder %s48_s0, 2 }
  0x26   : > { %3844 = sst [smem:[#allocation18_spill]] %s3102_s27  ;;  %s152_s20 = sadd.s32 1, %s3090_s25 }
  0x27   : > { %3845 = sst [smem:[#allocation19_spill]] %s3106_s28  ;;  %p159_p1 = scmp.ne.s32.totalorder %s3090_s25, %s3086_s2 }
  0x28   : > { %3846 = sst [smem:[#allocation20_spill]] %s3110_s4  ;;  %p160_p2 = scmp.eq.s32.totalorder %s3110_s4, 0 }
  0x29   : > { %s3911_s0 = smov (%p49_p0, %s48_s0), 0  ;;  %s3913_s21 = smov (!%p49_p0, %s51_s21), %s3106_s28 }
  0x2a   : > { %3847 = sst [smem:[#allocation21_spill]] %s3911_s0  ;;  %s149_s19 = ssub.s32 %s3102_s27, %s3911_s0 }
  0x2b   : > { %p3296_p3 = por %p160_p2, %p159_p1  ;;  %p53_p4 = scmp.ge.s32.totalorder %s3913_s21, 2 }
  0x2c   : > { %p150_p5 = scmp.eq.s32.totalorder %s149_s19, 0  ;;  %p165_p6 = scmp.ne.s32.totalorder %s3086_s2, %s3082_s24 }
  0x2d   : > { %p166_p7 = scmp.eq.s32.totalorder %s3282_s29, 0  ;;  %s3915_s21 = smov (%p53_p4, %s3913_s21), 0 }
  0x2e   : > { %3849 = sst [smem:[#allocation22_spill]] %s3915_s21  ;;  %s545_s16 = ssub.s32 %s3106_s28, %s3915_s21 }
  0x2f   : > { %s3305_s18 = scalar_select %p150_p5, %s3090_s25, %s152_s20  }
  0x30   : > { %p3307_p8 = por %p166_p7, %p165_p6  ;;  %p546_p9 = scmp.eq.s32.totalorder %s545_s16, 0 }
  0x31   : > { %3850 = sst [smem:[#allocation23_spill]] %s3305_s18  ;;  %s548_s15 = sadd.s32 1, %s3078_s23 }
  0x32   : > { %p558_p10 = scmp.ne.s32.totalorder %s3078_s23, %s3074_s22  ;;  %p559_p11 = scmp.eq.s32.totalorder %s3282_s29, 3 }
  0x33   : > { %s3318_s19 = scalar_select %p546_p9, %s3078_s23, %s548_s15  }
  0x34   : > { %p3320_p12 = por %p559_p11, %p558_p10  ;;  %p564_p13 = scmp.ne.s32.totalorder %s3074_s22, %s3070_s1 }
  0x35   : > { %3852 = sst [smem:[#allocation24_spill]] %s3318_s19  ;;  %p565_p0 = scmp.eq.s32.totalorder %s2294_s30, 3 }
  0x36   : > { %s3853_s24 = scalar_select %p3320_p12, 1, 0 }
  0x37   : > { %p2752_p1 = scmp.lt.s32.totalorder %s3110_s4, 4  ;;  %s3328_s20 = sand.u32 1, %s3090_s25  }
  0x38   : > { %3854 = sst [smem:[#allocation25_spill]] %s3853_s24  ;;  %p3330_p2 = por %p565_p0, %p564_p13 }
  0x39   : > { %s671_s16 = sand.u32 1, %s3110_s4   ;;  %p3337_p4 = pnand %p2752_p1, %p3296_p3 }
  0x3a   : > { %s3855_s18 = scalar_select %p3330_p2, 1, 0 }
  0x3b   : > { %s2298_s15 = sshll.u32 %s3328_s20, 7  ;;  %s2643_s28 = sshll.u32 %s3102_s27, 7 }
  0x3c   : > { %3856 = sst [smem:[#allocation26_spill]] %s3855_s18  ;;  %s675_s25 = scalar_lea.vmem [#allocation6], %s2298_s15 }
  0x3d   : > { %s3858_s10 = sld [smem:[#allocation37_spill]]  ;;  %s683_s1 = sshll.u32 %s675_s25, 4  ;;  %s684_s1 = int_to_ptr.vmem [resolvable:$true] %s683_s1 }
  0x3e   : > { %s3346_s17 = scalar_lea.sflag [#allocation7], %s671_s16  ;;  %s3112_s18 = smov 128  }
  0x3f   : > { %s3113_s14 = smov 8   ;;  %s3859_s12 = sld [smem:[#allocation39_spill]] }
  0x40   : > { %s704_s19 = scalar_lea.vmem [#allocation8], %s2298_s15  ;;  %p2304_p3 = scmp.ge.s32.totalorder %s3110_s4, 1 }
  0x41   : > { %p738_p5 = scmp.lt.s32.totalorder %s3110_s4, 5  ;;  %s3861_s13 = sld [smem:[#allocation31_spill]] }
  0x42   : > { %s3116_s4 = smov 64   ;;  %s3117_s9 = smov 4  }
  0x43   : > { %s680_s30 = scalar_lea.hbm %s3858_s10, %s2643_s28  ;;  %s712_s10 = sshll.u32 %s704_s19, 4  ;;  %s713_s10 = int_to_ptr.vmem [resolvable:$true] %s712_s10 }
  0x44   : > { %s681_s24 = sshll.u32 %s680_s30, 4  ;;  %p3356_p6 = pnand %p2304_p3, %p738_p5  ;;  %s682_s24 = int_to_ptr.hbm [resolvable:$true] %s681_s24 }
  0x45   : > { %2744 = dma.hbm_to_vmem [thread:$0]  (!%p3337_p4), %s682_s24, 2048, %s684_s1, %s3346_s17, %s3112_s18, %s3112_s18, %s3113_s14  }
  0x46   : > { %s709_s23 = scalar_lea.hbm %s3859_s12, %s2643_s28  ;;  %s2726_s14 = smul.u32 192, %s3328_s20 }
  0x47   : > { %s710_s25 = sshll.u32 %s709_s23, 4  ;;  %s2727_s18 = smul.u32 192, %s3102_s27  ;;  %s711_s25 = int_to_ptr.hbm [resolvable:$true] %s710_s25 }
  0x48   : > { %s620_s24 = scalar_lea.vmem [#allocation3], %s2726_s14  ;;  %s617_s23 = scalar_lea.sflag [#allocation4], %s3328_s20 }
  0x49   : > { %s625_s28 = scalar_lea.hbm %s3861_s13, %s2727_s18  ;;  %s628_s15 = sshll.u32 %s620_s24, 4  ;;  %s629_s15 = int_to_ptr.vmem [resolvable:$true] %s628_s15 }
  0x4a   : > { %s626_s30 = sshll.u32 %s625_s28, 4  ;;  %s3114_s19 = smov 192   ;;  %s627_s30 = int_to_ptr.hbm [resolvable:$true] %s626_s30 }
  0x4b   : > { %s3115_s12 = smov 12   ;;  %742 = sbr.rel (%p3356_p6) target bundleno = 2903 (0xb57), region = 100 }
  0x4c   : > { %2741 = dma.hbm_to_vmem [thread:$0]  (!%p3337_p4), %s627_s30, 3072, %s629_s15, %s617_s23, %s3114_s19, %s3114_s19, %s3115_s12  }
  0x4d   : > { %2747 = dma.hbm_to_vmem [thread:$0]  (!%p3337_p4), %s711_s25, 2048, %s713_s10, %s3346_s17, %s3116_s4, %s3116_s4, %s3117_s9  }
  0x4e   : > { %s3374_s18 = sand.u32 (!%p3356_p6), 1, %s3086_s2  }
  0x4f   : > { %s2728_s14 = smul.u32 (!%p3356_p6), 192, %s3374_s18  ;;  %s745_s1 = scalar_lea.sflag (!%p3356_p6), [#allocation4], %s3374_s18 }
  0x51   : > { %s3378_s20 = scalar_lea.vmem [#allocation3], %s2728_s14 }
  0x52   : > { %3057 = dma.done.wait (%p3307_p8), %s745_s1, 3072  }
  0x53   : > { %3059 = vsyncadd (%p3307_p8), %s745_s1, 4294964224  ;;  %s754_s9 = sand.u32 1, %s3282_s29   ;;  %s2305_s10 = sshll.u32 %s3374_s18, 7 }
  0x54   : > { %s755_s12 = scalar_lea.sflag [#allocation7], %s754_s9  ;;  %s3386_s4 = scalar_lea.vmem [#allocation6], %s2305_s10 }
  0x55   : > { %3061 = dma.done.wait (%p3307_p8), %s755_s12, 4096  }
  0x56   : > { %3063 = vsyncadd (%p3307_p8), %s755_s12, 4294963200  ;;  %p873_p7 = scmp.lt.s32.totalorder %s3098_s26, 1  ;;  %p880_p9 = scmp.lt.s32.totalorder %s3094_s3, 1 }
  0x57   : > { %s3863_s15 = sld [smem:[#allocation27_spill]]  ;;  %s3451_s28 = scalar_lea.vmem [#allocation8], %s2305_s10 }
  0x58   : > { %s3396_s17 = scalar_select %p873_p7, %s3098_s26, 1 }
  0x59   : > { %s3399_s29 = scalar_select %p880_p9, %s3094_s3, 1 }
  0x5a   : > { %s2307_s0 = sshll.u32 %s3396_s17, 3  ;;  %s3865_s5 = sld [smem:[#allocation32_spill]] }
  0x5b   : > { %s2729_s23 = smul.u32 3, %s3399_s29  ;;  %s2645_s19 = sshll.u32 %s3399_s29, 6 }
  0x5c   : > { %s3866_s6 = sld [smem:[#allocation33_spill]]  ;;  %s2310_s18 = sshll.u32 %s3399_s29, 1 }
  0x5d   : > { %s876_s30 = scalar_lea.vmem %s3863_s15, %s2307_s0  ;;  %s3868_s15 = sld [smem:[#allocation36_spill]] }
  0x5e   : > { %s3869_s26 = sld [smem:[#allocation40_spill]]  ;;  %s3873_s24 = sand.u32 1, %s3074_s22  }
  0x5f   : > { %s3872_s0 = sld [smem:[#allocation42_spill]]  ;;  %p2311_p8 = scmp.ne.s32.totalorder %s3094_s3, 0 }
  0x60   : > { %s3418_s21 = scalar_lea.vmem %s3865_s5, %s2729_s23  ;;  %s3870_s5 = sld [smem:[#allocation38_spill]] }
  0x61   : > { %s3874_s10 = sld [smem:[#allocation29_spill]] (!%p2311_p8) }
  0x62   : > { %s3423_s25 = scalar_lea.vmem %s3866_s6, %s2645_s19  ;;  %s3871_s19 = sld [smem:[#allocation41_spill]] }
  0x63   : > { %s897_s13 = scalar_lea.vmem %s3868_s15, %s3399_s29  ;;  %s3455_s15 = scalar_lea.vmem [#allocation9], %s3873_s24 }
  0x64   : > { %s904_s9 = scalar_lea.vmem %s3869_s26, %s3399_s29  ;;  %915 = sbr.rel (%p2311_p8) target bundleno = 373 (0x175), region = 116 }
  0x65   : > { %s910_s8 = scalar_lea.vmem %s3872_s0, %s3399_s29  ;;  %s3875_s0 = sld [smem:[#allocation30_spill]] (!%p2311_p8) }
  0x66   : > { %s3441_s7 = scalar_lea.vmem %s3870_s5, %s2310_s18 }
  0x68   : > { %s907_s6 = scalar_lea.vmem %s3871_s19, %s3399_s29 }
  0x69   : > { %v916_v0 = vld [vmem:[%s876_s30] sm:$0xff]  ;;  %v3118_v1 = vmov 128.0  }
  0x6a   : > { %919 = vadd.xlane.f32.xlu0 %v916_v0  ;;  %2855 = vrcp.f32 %v3118_v1  ;;  %v2853_v21 = vld [vmem:[%s3874_s10] ss:$0 sm:$0xff] }
  0x6b   : > { %v2854_v23 = vld [vmem:[%s3875_s0] ss:$0 sm:$0xff] }
  0x70   : > { %v2856_v2 = vpop.eup %2855 }
  0x71   : > { %v922_v3 = vmul.f32 128.0, %v2856_v2  ;;  %vm926_vm0 = vweird.f32 %v2856_v2 }
  0x73   : > { %v923_v4 = vsub.f32 1.0, %v922_v3 }
  0x75   : > { %v924_v5 = vmul.f32 %v2856_v2, %v923_v4 }
  0x77   : > { %v925_v6 = vadd.f32 %v2856_v2, %v924_v5 }
  0x79   : > { %v927_v7 = vsel %vm926_vm0, %v2856_v2, %v925_v6 }
  0xdd   : > { %v920_v8 = vpop.xlane.xlu0 %919 }
  0xde   : > { %v928_v9 = vmul.f32 %v927_v7, %v920_v8 }
  0xe0   : > { %v929_v10 = vsub.f32 %v916_v0, %v928_v9 }
  0xe2   : > { %v930_v11 = vmul.f32 %v929_v10, %v929_v10 }
  0xe4   : > { %931 = vadd.xlane.f32.xlu0 %v930_v11 }
 0x157   : > { %v932_v12 = vpop.xlane.xlu0 %931 }
 0x158   : > { %v933_v13 = vmul.f32 %v932_v12, %v927_v7 }
 0x15a   : > { %v934_v14 = vadd.f32 1e-05, %v933_v13 }
 0x15c   : > { %2857 = vrsqrt.f32 %v934_v14  ;;  %vm941_vm2 = vweird.f32 %v934_v14 }
 0x162   : > { %v2858_v15 = vpop.eup %2857 }
 0x163   : > { %v936_v16 = vmul.f32 %v2858_v15, %v934_v14  ;;  %vm942_vm1 = vweird.f32 %v2858_v15 }
 0x164   : > { %vm943_vm3 = vmor %vm941_vm2, %vm942_vm1 }
 0x165   : > { %v937_v17 = vmul.f32 %v2858_v15, %v936_v16 }
 0x167   : > { %v938_v18 = vmul.f32 0.5, %v937_v17 }
 0x169   : > { %v939_v19 = vsub.f32 1.5, %v938_v18 }
 0x16b   : > { %v940_v20 = vmul.f32 %v2858_v15, %v939_v19 }
 0x16d   : > { %v944_v22 = vsel %vm943_vm3, %v2858_v15, %v940_v20 }
 0x16e   : > { %v945_v24 = vmul.f32 %v944_v22, %v929_v10 }
 0x170   : > { %v949_v25 = vmul.f32 %v2853_v21, %v945_v24 }
 0x172   : > { %v953_v26 = vadd.f32 %v2854_v23, %v949_v25 }
 0x174   : > { %954 = vst [vmem:[#allocation2] sm:$0xff] %v953_v26 }
 0x175 PF: > { %v2398_v27 = vld [vmem:[%s3378_s20 + $0xa8] sm:$0xf]  ;;  %v2668_v28 = vld [vmem:[%s3378_s20 + $0xb0] sm:$0xf0]  ;;  %v2667_v29 = vld [vmem:[%s3378_s20 + $0xac] sm:$0xf] }
 0x176   : > { %v2399_v30 = vor.u32 %v2668_v28, %v2398_v27  ;;  %v2400_v31 = vld [vmem:[%s3378_s20 + $0xb4] sm:$0xf0]  ;;  %v2386_v32 = vld [vmem:[%s3378_s20 + $0x90] sm:$0xf]  ;;  %v2665_v33 = vld [vmem:[%s3378_s20 + $0x98] sm:$0xf0] }
 0x177   : > { %v2403_v34 = vor.u32 %v2667_v29, %v2400_v31  ;;  %v2664_v35 = vld [vmem:[%s3378_s20 + $0x94] sm:$0xf]  ;;  %v2388_v36 = vld [vmem:[%s3378_s20 + $0x9c] sm:$0xf0]  ;;  %v2387_v37 = vor.u32 %v2665_v33, %v2386_v32  ;;  %v2374_v39 = vld [vmem:[%s3378_s20 + $0x78] sm:$0xf] }
 0x178   : > { %1125 = vmatpush.bf16.msra.mxu0 %v2399_v30  ;;  %v2391_v38 = vor.u32 %v2664_v35, %v2388_v36  ;;  %v2662_v40 = vld [vmem:[%s3378_s20 + $0x80] sm:$0xf0]  ;;  %v2661_v41 = vld [vmem:[%s3378_s20 + $0x7c] sm:$0xf]  ;;  %v2376_v42 = vld [vmem:[%s3378_s20 + $0x84] sm:$0xf0] }
 0x179   : > { %1138 = vmatpush.bf16.msra.mxu1 %v2403_v34  ;;  %v2375_v43 = vor.u32 %v2662_v40, %v2374_v39  ;;  %v2379_v44 = vor.u32 %v2661_v41, %v2376_v42  ;;  %v2362_v45 = vld [vmem:[%s3378_s20 + $0x60] sm:$0xf]  ;;  %v2659_v46 = vld [vmem:[%s3378_s20 + $0x68] sm:$0xf0]  ;;  %v2658_v47 = vld [vmem:[%s3378_s20 + $0x64] sm:$0xf] }
 0x17a   : > { %v2364_v48 = vld [vmem:[%s3378_s20 + $0x6c] sm:$0xf0]  ;;  %v2363_v49 = vor.u32 %v2659_v46, %v2362_v45  ;;  %v2669_v51 = vld [vmem:[%s3378_s20 + $0xb8] sm:$0xf0]  ;;  %v2394_v52 = vld [vmem:[%s3378_s20 + $0x98] sm:$0xf] }
 0x17b   : > { %v2406_v50 = vld [vmem:[%s3378_s20 + $0xb0] sm:$0xf]  ;;  %v2367_v53 = vor.u32 %v2658_v47, %v2364_v48  ;;  %v2350_v54 = vld [vmem:[%s3378_s20 + $0x48] sm:$0xf]  ;;  %v2656_v55 = vld [vmem:[%s3378_s20 + $0x50] sm:$0xf0] }
 0x17c   : > { %1126 = vmatpush.bf16.msra.mxu0 %v2387_v37  ;;  %v2407_v56 = vor.u32 %v2669_v51, %v2406_v50  ;;  %v2666_v57 = vld [vmem:[%s3378_s20 + $0xa0] sm:$0xf0]  ;;  %v2655_v58 = vld [vmem:[%s3378_s20 + $0x4c] sm:$0xf]  ;;  %v2352_v59 = vld [vmem:[%s3378_s20 + $0x54] sm:$0xf0]  ;;  %v2351_v61 = vor.u32 %v2656_v55, %v2350_v54 }
 0x17d   : > { %1139 = vmatpush.bf16.msra.mxu1 %v2391_v38  ;;  %v2395_v60 = vor.u32 %v2666_v57, %v2394_v52  ;;  %v2338_v62 = vld [vmem:[%s3378_s20 + $0x30] sm:$0xf]  ;;  %v2382_v63 = vld [vmem:[%s3378_s20 + $0x80] sm:$0xf]  ;;  %v2663_v0 = vld [vmem:[%s3378_s20 + $0x88] sm:$0xf0]  ;;  %v2355_v1 = vor.u32 %v2655_v58, %v2352_v59 }
 0x17e   : > { %1151 = vmatpush.bf16.msra.mxu2 %v2407_v56  ;;  %v2653_v2 = vld [vmem:[%s3378_s20 + $0x38] sm:$0xf0]  ;;  %v2652_v3 = vld [vmem:[%s3378_s20 + $0x34] sm:$0xf]  ;;  %v2340_v4 = vld [vmem:[%s3378_s20 + $0x3c] sm:$0xf0]  ;;  %v2383_v5 = vor.u32 %v2663_v0, %v2382_v63 }
 0x17f   : > { %v2339_v6 = vor.u32 %v2653_v2, %v2338_v62  ;;  %v2370_v7 = vld [vmem:[%s3378_s20 + $0x68] sm:$0xf]  ;;  %v2660_v8 = vld [vmem:[%s3378_s20 + $0x70] sm:$0xf0]  ;;  %v2343_v9 = vor.u32 %v2652_v3, %v2340_v4  ;;  %v2326_v10 = vld [vmem:[%s3378_s20 + $0x18] sm:$0xf] }
 0x180   : > { %1127 = vmatpush.bf16.msra.mxu0 %v2375_v43  ;;  %v2650_v11 = vld [vmem:[%s3378_s20 + $0x20] sm:$0xf0]  ;;  %v2649_v12 = vld [vmem:[%s3378_s20 + $0x1c] sm:$0xf]  ;;  %v2328_v13 = vld [vmem:[%s3378_s20 + $0x24] sm:$0xf0]  ;;  %v2371_v14 = vor.u32 %v2660_v8, %v2370_v7 }
 0x181   : > { %1140 = vmatpush.bf16.msra.mxu1 %v2379_v44  ;;  %v2327_v15 = vor.u32 %v2650_v11, %v2326_v10  ;;  %v2358_v16 = vld [vmem:[%s3378_s20 + $0x50] sm:$0xf]  ;;  %v2657_v17 = vld [vmem:[%s3378_s20 + $0x58] sm:$0xf0]  ;;  %v2331_v18 = vor.u32 %v2649_v12, %v2328_v13  ;;  %v2314_v19 = vld [vmem:[%s3378_s20] sm:$0xf] }
 0x182   : > { %1152 = vmatpush.bf16.msra.mxu2 %v2395_v60  ;;  %v2647_v20 = vld [vmem:[%s3378_s20 + $0x8] sm:$0xf0]  ;;  %v2646_v21 = vld [vmem:[%s3378_s20 + $0x4] sm:$0xf]  ;;  %v2316_v22 = vld [vmem:[%s3378_s20 + $0xc] sm:$0xf0]  ;;  %v2359_v23 = vor.u32 %v2657_v17, %v2358_v16 }
 0x183   : > { %v2315_v24 = vor.u32 %v2647_v20, %v2314_v19  ;;  %v3506_v25 = vld [vmem:[#allocation2] sm:$0xff]  ;;  %v2654_v27 = vld [vmem:[%s3378_s20 + $0x40] sm:$0xf0]  ;;  %v2319_v28 = vor.u32 %v2646_v21, %v2316_v22  ;;  %v2334_v31 = vld [vmem:[%s3378_s20 + $0x20] sm:$0xf]  ;;  %vm1168_vm4 = vcmask 261120  }
 0x184   : > { %1128 = vmatpush.bf16.msra.mxu0 %v2363_v49  ;;  %v2346_v26 = vld [vmem:[%s3378_s20 + $0x38] sm:$0xf]  ;;  %v956_v29 = vpack.c.bf16 %v3506_v25, %v3506_v25  ;;  %v2651_v32 = vld [vmem:[%s3378_s20 + $0x28] sm:$0xf0]  ;;  %v2322_v34 = vld [vmem:[%s3378_s20 + $0x8] sm:$0xf] }
 0x185   : > { %1141 = vmatpush.bf16.msra.mxu1 %v2367_v53  ;;  %v2347_v30 = vor.u32 %v2654_v27, %v2346_v26  ;;  %v2335_v33 = vor.u32 %v2651_v32, %v2334_v31  ;;  %v2648_v35 = vld [vmem:[%s3378_s20 + $0x10] sm:$0xf0]  ;;  %v989_v37 = vld [vmem:[%s3418_s21] sm:$0x7]  ;;  %s3119_s20 = smov 64   ;;  %s3120_s21 = smov 96  }
 0x186   : > { %1153 = vmatpush.bf16.msra.mxu2 %v2383_v5  ;;  %v2323_v36 = vor.u32 %v2648_v35, %v2322_v34  ;;  %v991_v38 = vperm.slane %v989_v37, 0  ;;  %v992_v39 = vperm.slane %v989_v37, 1  ;;  %s3121_s18 = smov 32   ;;  %v993_v54 = vperm.slane %v989_v37, 2  ;;  %s3876_s12 = sld [smem:[#allocation28_spill]] }
 0x187   : > { %vm1209_vm5 = vcmask 1043456   ;;  %vm1193_vm6 = vcmask 64512   ;;  %vm1422_vm7 = vcmask 523264   ;;  %vm1424_vm8 = vcmask 785408   ;;  %s3880_s11 = sld [smem:[#allocation35_spill]]  ;;  %p2576_p10 = scmp.ne.s32.totalorder %s3094_s3, 1 }
 0x188   : > { %1129 = vmatpush.bf16.msra.mxu0 %v2351_v61  ;;  %s3886_s23 = sld [smem:[#allocation43_spill]] (!%p2576_p10) }
 0x189   : > { %1142 = vmatpush.bf16.msra.mxu1 %v2355_v1 }
 0x18a   : > { %1154 = vmatpush.bf16.msra.mxu2 %v2371_v14 }
 0x18c   : > { %1130 = vmatpush.bf16.msra.mxu0 %v2339_v6  ;;  %s3877_s2 = scalar_lea.vmem %s3876_s12, %s3396_s17 }
 0x18d   : > { %1143 = vmatpush.bf16.msra.mxu1 %v2343_v9  ;;  %v2859_v63 = vld [vmem:[%s3877_s2] ss:$0 sm:$0xff]  ;;  %s3881_s24 = scalar_lea.vmem %s3880_s11, %s3399_s29 }
 0x18e   : > { %1155 = vmatpush.bf16.msra.mxu2 %v2359_v23  ;;  %s3887_s12 = smov (!%p2576_p10), %s3886_s23 }
 0x190   : > { %1131 = vmatpush.bf16.msra.mxu0 %v2327_v15 }
 0x191   : > { %1144 = vmatpush.bf16.msra.mxu1 %v2331_v18 }
 0x192   : > { %1156 = vmatpush.bf16.msra.mxu2 %v2347_v30 }
 0x194   : > { %1132 = vmatpush.bf16.msra.mxu0 %v2315_v24 }
 0x195   : > { %1145 = vmatpush.bf16.msra.mxu1 %v2319_v28 }
 0x196   : > { %1157 = vmatpush.bf16.msra.mxu2 %v2335_v33 }
 0x197   : > { %1133 = vmatmul.bf16.vlgmr.msra.gmra.mxu0 %v956_v29 }
 0x198   : > { %1146 = vmatmul.bf16.vlgmr.msra.gmra.mxu1 %v956_v29 }
 0x19a   : > { %1158 = vmatpush.bf16.msra.mxu2 %v2323_v36 }
 0x19d   : > { %1159 = vmatmul.bf16.vlgmr.msra.gmra.mxu2 %v956_v29 }
 0x214   : > { %v1134_v40 = vpop.f32.mrf.mxu0 }
 0x215   : > { %v1147_v41 = vpop.f32.mrf.mxu1  ;;  %v1135_v42 = vadd.f32 %v1134_v40, %v991_v38 }
 0x216   : > { %v1148_v43 = vadd.f32 %v1147_v41, %v992_v39 }
 0x217   : > { %v1164_v45 = vpack.c.bf16 %v1135_v42, %v1135_v42 }
 0x218   : > { %v1165_v44 = vpack.c.bf16 %v1148_v43, %v1148_v43 }
 0x219   : > { %v1227_v51 = vunpack.c.l.b16 %v1164_v45 }
 0x21a   : > { %v1232_v46 = vunpack.c.l.b16 %v1165_v44  ;;  %v1173_v47 = vsel %vm1168_vm4, %v1165_v44, 0 }
 0x21b   : > { %1182 = vmatpush.bf16.xpose.msra.mxu3 %v1173_v47  ;;  %v1228_v52 = vpack.c.b16 %v1227_v51, %v1227_v51 }
 0x21c   : > { %v1233_v48 = vpack.c.b16 %v1232_v46, %v1232_v46  ;;  %v1136_v49 = vpop.f32.mrf.mxu0 }
 0x21d   : > { %v1149_v50 = vpop.f32.mrf.mxu1 }
 0x21e   : > { %1295 = vrot.lane.b32.xlu2 %v1233_v48, %s3119_s20  ;;  %1234 = vrot.lane.b32.xlu1 %v1233_v48, %s3120_s21 }
 0x220   : > { %v1160_v53 = vpop.f32.mrf.mxu2 }
 0x221   : > { %v1161_v55 = vadd.f32 %v1160_v53, %v993_v54 }
 0x222   : > { %2408 = vmatmul.msk.bf16.vlgmr.msra.gmra.mxu3 %vm1168_vm4, %v1164_v45 }
 0x223   : > { %v3524_v57 = vpack.c.bf16 %v1161_v55, %v1161_v55 }
 0x225   : > { %v1211_v58 = vsel %vm1209_vm5, %v3524_v57, 0  ;;  %v1270_v37 = vunpack.c.l.b16 %v3524_v57 }
 0x226   : > { %1353 = vrot.lane.b32.xlu2 %v1233_v48, %s3121_s18  ;;  %1229 = vrot.lane.b32.xlu1 %v1228_v52, %s3120_s21 }
 0x227   : > { %1220 = vmatpush.bf16.msrb.mxu3 %v1211_v58  ;;  %v1271_v38 = vpack.c.b16 %v1270_v37, %v1270_v37  ;;  %v2693_v37 = vld [vmem:[%s3386_s4 + $0x74] sm:$0xf0] }
 0x228   : > { %v1162_v56 = vpop.f32.mrf.mxu2 }
 0x22e   : > { %1351 = vrot.lane.b32.xlu1 %v1228_v52, %s3121_s18 }
 0x278   : > { %v1296_v59 = vpop.permute.xlu2 %1295 }
 0x279   : > { %v1301_v60 = vsel %vm1168_vm4, %v1296_v59, 0 }
 0x27a   : > { %1310 = vmatpush.bf16.xpose.msrb.mxu2 %v1301_v60 }
 0x280   : > { %v1354_v13 = vpop.permute.xlu2 %1353 }
 0x281   : > { %v1359_v15 = vsel %vm1168_vm4, %v1354_v13, 0 }
 0x290   : > { %v1235_v61 = vpop.permute.xlu1 %1234 }
 0x291   : > { %v1240_v62 = vsel %vm1168_vm4, %v1235_v61, 0 }
 0x292   : > { %1249 = vmatpush.bf16.xpose.msra.mxu3 %v1240_v62 }
 0x298   : > { %v1230_v17 = vpop.permute.xlu1 %1229 }
 0x2a0   : > { %v1352_v18 = vpop.permute.xlu1 %1351 }
 0x2a5   : > { %v1184_v0 = vpop.f32.mrf.mxu3 }
 0x2a6   : > { %v1188_v1 = vmul.f32 0.17677669, %v1184_v0 }
 0x2a8   : > { %v1192_v2 = vadd.f32 %v2859_v63, %v1188_v1 }
 0x2aa   : > { %v1194_v3 = vsel %vm1193_vm6, %v1192_v2, -inf }
 0x2ab   : > { %1195 = vmax.xlane.f32.xlu0 %v1194_v3 }
 0x2ad   : > { %v1186_v4 = vpop.f32.mrf.mxu3 }
 0x31e   : > { %v1196_v5 = vpop.xlane.xlu0 %1195 }
 0x31f   : > { %v1197_v6 = vsub.f32 %v1192_v2, %v1196_v5 }
 0x321   : > { %v1198_v7 = vmul.f32 1.442695, %v1197_v6 }
 0x323   : > { %2866 = vpow2.f32 %v1198_v7 }
 0x329   : > { %v2867_v8 = vpop.eup %2866 }
 0x32a   : > { %v1200_v9 = vsel %vm1193_vm6, %v2867_v8, 0.0 }
 0x32b   : > { %1201 = vadd.xlane.f32.xlu0 %v1200_v9 }
 0x33f   : > { %1293 = vrot.lane.b32.xlu0 %v1228_v52, %s3119_s20 }
 0x39e   : > { %v1202_v10 = vpop.xlane.xlu0 %1201 }
 0x39f   : > { %2868 = vrcp.f32 %v1202_v10 }
 0x3a5   : > { %v2869_v11 = vpop.eup %2868 }
 0x3a6   : > { %v1204_v12 = vmul.f32 %v2869_v11, %v2867_v8 }
 0x3a8   : > { %v1205_v14 = vpack.c.bf16 %v1204_v12, %v1204_v12 }
 0x3aa   : > { %2409 = vmatmul.msk.bf16.vlgmr.msrb.gmra.mxu3 %vm1193_vm6, %v1205_v14  ;;  %v2677_v14 = vld [vmem:[%s3423_s25 + $0x38] sm:$0xff] }
 0x3ab   : > { %1368 = vmatpush.bf16.xpose.msrb.mxu3 %v1359_v15  ;;  %1495 = vmatpush.bf16.msrb.mxu1 %v2677_v14  ;;  %v2676_v15 = vld [vmem:[%s3423_s25 + $0x30] sm:$0xff] }
 0x3af   : > { %1496 = vmatpush.bf16.msrb.mxu1 %v2676_v15  ;;  %v2468_v15 = vld [vmem:[%s3386_s4 + $0x28] sm:$0xf0] }
 0x3b1   : > { %v1294_v16 = vpop.permute.xlu0 %1293 }
 0x3b2   : > { %2412 = vmatmul.msk.bf16.vlgmr.msrb.gmra.mxu2 %vm1168_vm4, %v1294_v16  ;;  %v2675_v16 = vld [vmem:[%s3423_s25 + $0x28] sm:$0xff] }
 0x3b3   : > { %1497 = vmatpush.bf16.msrb.mxu1 %v2675_v16 }
 0x3ba   : > { %2410 = vmatmul.msk.bf16.vlgmr.msra.gmra.mxu3 %vm1168_vm4, %v1230_v17  ;;  %v2674_v17 = vld [vmem:[%s3423_s25 + $0x20] sm:$0xff] }
 0x3bb   : > { %1498 = vmatpush.bf16.msrb.mxu1 %v2674_v17  ;;  %v2458_v17 = vld [vmem:[%s3386_s4 + $0x10] sm:$0xf] }
 0x3ca   : > { %2414 = vmatmul.msk.bf16.vlgmr.msrb.gmra.mxu3 %vm1168_vm4, %v1352_v18  ;;  %v2673_v18 = vld [vmem:[%s3423_s25 + $0x18] sm:$0xff] }
 0x3cb   : > { %1499 = vmatpush.bf16.msrb.mxu1 %v2673_v18  ;;  %v2681_v18 = vld [vmem:[%s3386_s4 + $0x14] sm:$0xf0] }
 0x42d   : > { %v3543_v19 = vpop.f32.mrf.mxu3 }
 0x435   : > { %v1224_v20 = vpop.f32.mrf.mxu3  ;;  %v1312_v21 = vpop.f32.mrf.mxu2 }
 0x436   : > { %v1316_v22 = vmul.f32 0.17677669, %v1312_v21  ;;  %v2672_v20 = vld [vmem:[%s3423_s25 + $0x10] sm:$0xff]  ;;  %v2671_v21 = vld [vmem:[%s3423_s25 + $0x8] sm:$0xff] }
 0x437   : > { %1500 = vmatpush.bf16.msrb.mxu1 %v2672_v20  ;;  %v2680_v20 = vld [vmem:[%s3386_s4 + $0x14] sm:$0xf] }
 0x438   : > { %v1317_v23 = vadd.f32 %v2859_v63, %v1316_v22  ;;  %v2670_v22 = vld [vmem:[%s3423_s25] sm:$0xff]  ;;  %s3878_s25 = sld [smem:[#allocation34_spill]] }
 0x43a   : > { %v1318_v24 = vsel %vm1193_vm6, %v1317_v23, -inf }
 0x43b   : > { %1319 = vmax.xlane.f32.xlu1 %v1318_v24  ;;  %1501 = vmatpush.bf16.msrb.mxu1 %v2671_v21  ;;  %v2459_v21 = vor.u32 %v2681_v18, %v2458_v17 }
 0x43d   : > { %v1251_v26 = vpop.f32.mrf.mxu3  ;;  %v1314_v27 = vpop.f32.mrf.mxu2 }
 0x43e   : > { %v1255_v28 = vmul.f32 0.17677669, %v1251_v26  ;;  %s3879_s19 = scalar_lea.vmem %s3878_s25, %s3399_s29  ;;  %s3888_s29 = sld [smem:[#allocation45_spill]] (!%p2576_p10) }
 0x43f   : > { %1502 = vmatpush.bf16.msrb.mxu1 %v2670_v22  ;;  %v2460_v22 = vld [vmem:[%s3386_s4 + $0x18] sm:$0xf0]  ;;  %s3889_s25 = sld [smem:[#allocation44_spill]] (!%p2576_p10) }
 0x440   : > { %v1256_v29 = vadd.f32 %v2859_v63, %v1255_v28 }
 0x442   : > { %v1257_v30 = vsel %vm1193_vm6, %v1256_v29, -inf }
 0x443   : > { %1258 = vmax.xlane.f32.xlu2 %v1257_v30 }
 0x445   : > { %v1253_v31 = vpop.f32.mrf.mxu3 }
 0x446   : > { %v2860_v31 = vld [vmem:[%s3879_s19] ss:$0 sm:$0xff] }
 0x44d   : > { %v1370_v32 = vpop.f32.mrf.mxu3 }
 0x44e   : > { %v1374_v33 = vmul.f32 0.17677669, %v1370_v32 }
 0x450   : > { %v1375_v34 = vadd.f32 %v2859_v63, %v1374_v33 }
 0x452   : > { %v1376_v35 = vsel %vm1193_vm6, %v1375_v34, -inf }
 0x453   : > { %1377 = vmax.xlane.f32.xlu0 %v1376_v35 }
 0x455   : > { %v1372_v36 = vpop.f32.mrf.mxu3 }
 0x456   : > { %v3122_v36 = vmov 128.0  }
 0x467   : > { %1330 = vrot.lane.b32.xlu0 %v1271_v38, %s3119_s20 }
 0x4ae   : > { %v1320_v39 = vpop.xlane.xlu1 %1319 }
 0x4af   : > { %v1321_v40 = vsub.f32 %v1317_v23, %v1320_v39 }
 0x4b1   : > { %v1322_v41 = vmul.f32 1.442695, %v1321_v40  ;;  %v2508_v40 = vld [vmem:[%s3386_s4 + $0x78] sm:$0xf0] }
 0x4b3   : > { %2870 = vpow2.f32 %v1322_v41 }
 0x4b6   : > { %v1259_v42 = vpop.xlane.xlu2 %1258 }
 0x4b7   : > { %v1260_v43 = vsub.f32 %v1256_v29, %v1259_v42 }
 0x4b9   : > { %v2871_v44 = vpop.eup %2870  ;;  %v1261_v45 = vmul.f32 1.442695, %v1260_v43 }
 0x4ba   : > { %v1324_v46 = vsel %vm1193_vm6, %v2871_v44, 0.0 }
 0x4bb   : > { %2872 = vpow2.f32 %v1261_v45  ;;  %1325 = vadd.xlane.f32.xlu1 %v1324_v46 }
 0x4c1   : > { %v2873_v47 = vpop.eup %2872 }
 0x4c2   : > { %v1263_v48 = vsel %vm1193_vm6, %v2873_v47, 0.0 }
 0x4c3   : > { %1264 = vadd.xlane.f32.xlu2 %v1263_v48 }
 0x4c6   : > { %v1378_v49 = vpop.xlane.xlu0 %1377 }
 0x4c7   : > { %v1379_v50 = vsub.f32 %v1375_v34, %v1378_v49 }
 0x4c9   : > { %v1380_v51 = vmul.f32 1.442695, %v1379_v50 }
 0x4cb   : > { %2874 = vpow2.f32 %v1380_v51  ;;  %v2498_v51 = vld [vmem:[%s3386_s4 + $0x60] sm:$0xf] }
 0x4d1   : > { %v2875_v52 = vpop.eup %2874 }
 0x4d2   : > { %v1382_v53 = vsel %vm1193_vm6, %v2875_v52, 0.0 }
 0x4d3   : > { %1383 = vadd.xlane.f32.xlu1 %v1382_v53  ;;  %v2690_v53 = vld [vmem:[%s3386_s4 + $0x64] sm:$0xf] }
 0x4d9   : > { %v1331_v54 = vpop.permute.xlu0 %1330 }
 0x4da   : > { %v1336_v55 = vsel %vm1209_vm5, %v1331_v54, 0 }
 0x4db   : > { %1272 = vrot.lane.b32.xlu2 %v1271_v38, %s3120_s21  ;;  %1345 = vmatpush.bf16.msra.mxu2 %v1336_v55  ;;  %v2500_v55 = vld [vmem:[%s3386_s4 + $0x68] sm:$0xf0] }
 0x4ec   : > { %1388 = vrot.lane.b32.xlu1 %v1271_v38, %s3121_s18  ;;  %v2692_v38 = vld [vmem:[%s3386_s4 + $0x74] sm:$0xf] }
 0x4ed   : > { %v2511_v41 = vor.u32 %v2692_v38, %v2508_v40 }
 0x4ef   : > { %1662 = vmatpush.bf16.msra.mxu3 %v2511_v41  ;;  %v2861_v41 = vld [vmem:[%s3881_s24] ss:$0 sm:$0xff] }
 0x52e   : > { %v1326_v56 = vpop.xlane.xlu1 %1325 }
 0x52f   : > { %2876 = vrcp.f32 %v1326_v56  ;;  %v2503_v56 = vor.u32 %v2690_v53, %v2500_v55  ;;  %v2706_v53 = vld [vmem:[%s3451_s28 + $0x60] sm:$0xff]  ;;  %v2705_v55 = vld [vmem:[%s3451_s28 + $0x58] sm:$0xff] }
 0x531   : > { %1663 = vmatpush.bf16.msra.mxu3 %v2503_v56  ;;  %v2696_v56 = vld [vmem:[%s3451_s28 + $0x10] sm:$0xff] }
 0x535   : > { %v2877_v57 = vpop.eup %2876 }
 0x536   : > { %v1328_v58 = vmul.f32 %v2877_v57, %v2871_v44  ;;  %v1265_v59 = vpop.xlane.xlu2 %1264  ;;  %v2490_v57 = vld [vmem:[%s3386_s4 + $0x50] sm:$0xf] }
 0x537   : > { %2878 = vrcp.f32 %v1265_v59  ;;  %v2688_v59 = vld [vmem:[%s3386_s4 + $0x54] sm:$0xf] }
 0x538   : > { %v1329_v60 = vpack.c.bf16 %v1328_v58, %v1328_v58  ;;  %v2689_v58 = vld [vmem:[%s3386_s4 + $0x54] sm:$0xf0] }
 0x53a   : > { %2413 = vmatmul.msk.bf16.vlgmr.msra.gmra.mxu2 %vm1193_vm6, %v1329_v60  ;;  %v2491_v60 = vor.u32 %v2689_v58, %v2490_v57  ;;  %v2704_v57 = vld [vmem:[%s3451_s28 + $0x50] sm:$0xff]  ;;  %v2695_v58 = vld [vmem:[%s3451_s28 + $0x8] sm:$0xff] }
 0x53d   : > { %v2879_v61 = vpop.eup %2878 }
 0x53e   : > { %v1267_v62 = vmul.f32 %v2879_v61, %v2873_v47  ;;  %v1273_v63 = vpop.permute.xlu2 %1272  ;;  %v2492_v61 = vld [vmem:[%s3386_s4 + $0x58] sm:$0xf0] }
 0x53f   : > { %v1278_v0 = vsel %vm1209_vm5, %v1273_v63, 0  ;;  %v2482_v63 = vld [vmem:[%s3386_s4 + $0x40] sm:$0xf] }
 0x540   : > { %1287 = vmatpush.bf16.msrb.mxu0 %v1278_v0  ;;  %v1268_v1 = vpack.c.bf16 %v1267_v62, %v1267_v62  ;;  %v2495_v62 = vor.u32 %v2688_v59, %v2492_v61  ;;  %v2687_v0 = vld [vmem:[%s3386_s4 + $0x44] sm:$0xf0]  ;;  %v2702_v61 = vld [vmem:[%s3451_s28 + $0x40] sm:$0xff] }
 0x541   : > { %v2703_v59 = vld [vmem:[%s3451_s28 + $0x48] sm:$0xff] }
 0x542   : > { %1664 = vmatpush.bf16.msra.mxu3 %v2495_v62  ;;  %v1563_v62 = vld [vmem:[%s3441_s7] sm:$0x3] }
 0x543   : > { %2411 = vmatmul.msk.bf16.vlgmr.msrb.gmra.mxu0 %vm1193_vm6, %v1268_v1  ;;  %v2686_v1 = vld [vmem:[%s3386_s4 + $0x44] sm:$0xf] }
 0x546   : > { %v1384_v2 = vpop.xlane.xlu1 %1383 }
 0x547   : > { %2880 = vrcp.f32 %v1384_v2  ;;  %v2483_v2 = vor.u32 %v2687_v0, %v2482_v63  ;;  %v1565_v63 = vperm.slane %v1563_v62, 0  ;;  %v1566_v0 = vperm.slane %v1563_v62, 1 }
 0x548   : > { %2882 = vrcp.f32 %v3122_v36 }
 0x54d   : > { %v2881_v3 = vpop.eup %2880 }
 0x54e   : > { %v1386_v4 = vmul.f32 %v2881_v3, %v2875_v52  ;;  %v2883_v42 = vpop.eup %2882  ;;  %v2691_v52 = vld [vmem:[%s3386_s4 + $0x64] sm:$0xf0]  ;;  %v2484_v3 = vld [vmem:[%s3386_s4 + $0x48] sm:$0xf0] }
 0x54f   : > { %v1514_v43 = vmul.f32 128.0, %v2883_v42  ;;  %vm1518_vm9 = vweird.f32 %v2883_v42  ;;  %v2499_v54 = vor.u32 %v2691_v52, %v2498_v51  ;;  %v2707_v51 = vld [vmem:[%s3451_s28 + $0x68] sm:$0xff]  ;;  %v2698_v52 = vld [vmem:[%s3451_s28 + $0x20] sm:$0xff] }
 0x550   : > { %v1387_v7 = vpack.c.bf16 %v1386_v4, %v1386_v4  ;;  %v2487_v4 = vor.u32 %v2686_v1, %v2484_v3 }
 0x551   : > { %v1515_v44 = vsub.f32 1.0, %v1514_v43 }
 0x552   : > { %1665 = vmatpush.bf16.msra.mxu3 %v2487_v4 }
 0x55e   : > { %v1389_v5 = vpop.permute.xlu1 %1388 }
 0x55f   : > { %v1394_v6 = vsel %vm1209_vm5, %v1389_v5, 0  ;;  %v2474_v5 = vld [vmem:[%s3386_s4 + $0x30] sm:$0xf] }
 0x560   : > { %1403 = vmatpush.bf16.msra.mxu0 %v1394_v6  ;;  %v2685_v6 = vld [vmem:[%s3386_s4 + $0x34] sm:$0xf0] }
 0x563   : > { %2415 = vmatmul.msk.bf16.vlgmr.msra.gmra.mxu0 %vm1193_vm6, %v1387_v7  ;;  %v2684_v7 = vld [vmem:[%s3386_s4 + $0x34] sm:$0xf] }
 0x5bd   : > { %v1347_v8 = vpop.f32.mrf.mxu2 }
 0x5c0   : > { %v1289_v9 = vpop.f32.mrf.mxu0 }
 0x5c1   : > { %1410 = vrot.lane.b32.xlu2 %v1289_v9, %s3121_s18  ;;  %v2476_v9 = vld [vmem:[%s3386_s4 + $0x38] sm:$0xf0] }
 0x5c5   : > { %v1349_v10 = vpop.f32.mrf.mxu2 }
 0x5c6   : > { %v2479_v10 = vor.u32 %v2684_v7, %v2476_v9 }
 0x5c8   : > { %v1291_v11 = vpop.f32.mrf.mxu0  ;;  %1666 = vmatpush.bf16.msra.mxu3 %v2479_v10 }
 0x5c9   : > { %1414 = vrot.lane.b32.xlu2 %v1347_v8, %s3119_s20  ;;  %v2475_v8 = vor.u32 %v2685_v6, %v2474_v5  ;;  %v2466_v11 = vld [vmem:[%s3386_s4 + $0x20] sm:$0xf] }
 0x5e0   : > { %v1405_v12 = vpop.f32.mrf.mxu0 }
 0x5e1   : > { %1418 = vrot.lane.b32.xlu0 %v1405_v12, %s3120_s21  ;;  %v2683_v12 = vld [vmem:[%s3386_s4 + $0x24] sm:$0xf0] }
 0x5e2   : > { %v2467_v14 = vor.u32 %v2683_v12, %v2466_v11 }
 0x5e8   : > { %v1407_v13 = vpop.f32.mrf.mxu0 }
 0x5e9   : > { %v2682_v13 = vld [vmem:[%s3386_s4 + $0x24] sm:$0xf] }
 0x5ea   : > { %v2471_v16 = vor.u32 %v2682_v13, %v2468_v15 }
 0x5ec   : > { %1667 = vmatpush.bf16.msra.mxu3 %v2471_v16 }
 0x61b   : > { %v1411_v23 = vpop.permute.xlu2 %1410 }
 0x61c   : > { %v1421_v26 = vsel %vm1168_vm4, %v3543_v19, %v1411_v23  ;;  %v2506_v19 = vld [vmem:[%s3386_s4 + $0x70] sm:$0xf]  ;;  %v2450_v23 = vld [vmem:[%s3386_s4] sm:$0xf] }
 0x61d   : > { %v2507_v39 = vor.u32 %v2693_v37, %v2506_v19 }
 0x61f   : > { %1649 = vmatpush.bf16.msrb.mxu2 %v2507_v39 }
 0x623   : > { %v1415_v24 = vpop.permute.xlu2 %1414  ;;  %1650 = vmatpush.bf16.msrb.mxu2 %v2499_v54  ;;  %v2697_v54 = vld [vmem:[%s3451_s28 + $0x18] sm:$0xff] }
 0x624   : > { %v1423_v27 = vsel %vm1422_vm7, %v1421_v26, %v1415_v24  ;;  %v2679_v24 = vld [vmem:[%s3386_s4 + $0x4] sm:$0xf0]  ;;  %v2463_v26 = vor.u32 %v2680_v20, %v2460_v22 }
 0x626   : > { %1668 = vmatpush.bf16.msra.mxu3 %v2463_v26 }
 0x627   : > { %1651 = vmatpush.bf16.msrb.mxu2 %v2491_v60  ;;  %v2694_v60 = vld [vmem:[%s3451_s28] sm:$0xff] }
 0x62b   : > { %1652 = vmatpush.bf16.msrb.mxu2 %v2483_v2 }
 0x62f   : > { %1653 = vmatpush.bf16.msrb.mxu2 %v2475_v8 }
 0x633   : > { %1654 = vmatpush.bf16.msrb.mxu2 %v2467_v14 }
 0x637   : > { %1655 = vmatpush.bf16.msrb.mxu2 %v2459_v21 }
 0x653   : > { %v1419_v28 = vpop.permute.xlu0 %1418 }
 0x654   : > { %v1425_v29 = vsel %vm1424_vm8, %v1423_v27, %v1419_v28  ;;  %v2678_v27 = vld [vmem:[%s3386_s4 + $0x4] sm:$0xf]  ;;  %v2452_v28 = vld [vmem:[%s3386_s4 + $0x8] sm:$0xf0]  ;;  %s3890_s4 = sld [smem:[#allocation46_spill]] (!%p2576_p10) }
 0x655   : > { %v1426_v30 = vpack.c.bf16 %v1425_v29, %v1425_v29  ;;  %v2451_v29 = vor.u32 %v2679_v24, %v2450_v23 }
 0x657   : > { %1503 = vmatmul.bf16.vlgmr.msrb.gmra.mxu1 %v1426_v30  ;;  %v2455_v30 = vor.u32 %v2678_v27, %v2452_v28  ;;  %1656 = vmatpush.bf16.msrb.mxu2 %v2451_v29  ;;  %v2863_v29 = vld [vmem:[%s904_s9] ss:$0 sm:$0xff] }
 0x659   : > { %1669 = vmatpush.bf16.msra.mxu3 %v2455_v30 }
 0x6d4   : > { %v1504_v32 = vpop.f32.mrf.mxu1 }
 0x6d5   : > { %v1505_v33 = vadd.f32 %v2860_v31, %v1504_v32  ;;  %v2701_v31 = vld [vmem:[%s3451_s28 + $0x38] sm:$0xff] }
 0x6d6   : > { %v2709_v32 = vld [vmem:[%s3451_s28 + $0x78] sm:$0xff]  ;;  %1827 = vmatpush.bf16.msrb.mxu0 %v2701_v31 }
 0x6d7   : > { %v1508_v34 = vadd.f32 %v1505_v33, %v3506_v25  ;;  %v1516_v25 = vmul.f32 %v2883_v42, %v1515_v44  ;;  %1840 = vmatpush.bf16.msra.mxu1 %v2709_v32  ;;  %v2862_v44 = vld [vmem:[%s897_s13] ss:$0 sm:$0xff] }
 0x6d9   : > { %1511 = vadd.xlane.f32.xlu2 %v1508_v34  ;;  %v1517_v45 = vadd.f32 %v2883_v42, %v1516_v25 }
 0x6db   : > { %v3584_v46 = vsel %vm1518_vm9, %v2883_v42, %v1517_v45 }
 0x6dc   : > { %v1506_v35 = vpop.f32.mrf.mxu1 }
 0x74c   : > { %v1512_v47 = vpop.xlane.xlu2 %1511 }
 0x74d   : > { %v1520_v48 = vmul.f32 %v3584_v46, %v1512_v47 }
 0x74f   : > { %v3587_v49 = vsub.f32 %v1508_v34, %v1520_v48  ;;  %v2700_v48 = vld [vmem:[%s3451_s28 + $0x30] sm:$0xff] }
 0x750   : > { %1828 = vmatpush.bf16.msrb.mxu0 %v2700_v48 }
 0x751   : > { %v1522_v50 = vmul.f32 %v3587_v49, %v3587_v49 }
 0x753   : > { %1523 = vadd.xlane.f32.xlu0 %v1522_v50  ;;  %v2708_v50 = vld [vmem:[%s3451_s28 + $0x70] sm:$0xff] }
 0x754   : > { %1841 = vmatpush.bf16.msra.mxu1 %v2708_v50  ;;  %v2864_v50 = vld [vmem:[%s907_s6] ss:$0 sm:$0xff] }
 0x758   : > { %1842 = vmatpush.bf16.msra.mxu1 %v2707_v51 }
 0x75c   : > { %1843 = vmatpush.bf16.msra.mxu1 %v2706_v53 }
 0x760   : > { %1844 = vmatpush.bf16.msra.mxu1 %v2705_v55 }
 0x764   : > { %1845 = vmatpush.bf16.msra.mxu1 %v2704_v57 }
 0x768   : > { %1846 = vmatpush.bf16.msra.mxu1 %v2703_v59 }
 0x76c   : > { %1847 = vmatpush.bf16.msra.mxu1 %v2702_v61 }
 0x7c6   : > { %v1524_v33 = vpop.xlane.xlu0 %1523 }
 0x7c7   : > { %v1525_v34 = vmul.f32 %v1524_v33, %v3584_v46 }
 0x7c9   : > { %v1526_v35 = vadd.f32 1e-05, %v1525_v34 }
 0x7cb   : > { %2884 = vrsqrt.f32 %v1526_v35  ;;  %vm1533_vm11 = vweird.f32 %v1526_v35 }
 0x7d1   : > { %v2885_v36 = vpop.eup %2884 }
 0x7d2   : > { %v1528_v19 = vmul.f32 %v2885_v36, %v1526_v35  ;;  %vm1534_vm10 = vweird.f32 %v2885_v36 }
 0x7d3   : > { %vm1535_vm12 = vmor %vm1533_vm11, %vm1534_vm10 }
 0x7d4   : > { %v1529_v37 = vmul.f32 %v2885_v36, %v1528_v19 }
 0x7d6   : > { %v1530_v38 = vmul.f32 0.5, %v1529_v37 }
 0x7d8   : > { %v1531_v39 = vsub.f32 1.5, %v1530_v38 }
 0x7da   : > { %v1532_v40 = vmul.f32 %v2885_v36, %v1531_v39 }
 0x7dc   : > { %v1536_v42 = vsel %vm1535_vm12, %v2885_v36, %v1532_v40 }
 0x7dd   : > { %v1537_v43 = vmul.f32 %v1536_v42, %v3587_v49  ;;  %v2699_v49 = vld [vmem:[%s3451_s28 + $0x28] sm:$0xff] }
 0x7de   : > { %1829 = vmatpush.bf16.msrb.mxu0 %v2699_v49 }
 0x7df   : > { %v1541_v25 = vmul.f32 %v2861_v41, %v1537_v43 }
 0x7e1   : > { %v3633_v45 = vadd.f32 %v2862_v44, %v1541_v25 }
 0x7e2   : > { %1830 = vmatpush.bf16.msrb.mxu0 %v2698_v52 }
 0x7e3   : > { %v1546_v47 = vpack.c.bf16 %v3633_v45, %v3633_v45 }
 0x7e5   : > { %1657 = vmatmul.bf16.vlgmr.msrb.gmra.mxu2 %v1546_v47  ;;  %1670 = vmatmul.bf16.vlgmr.msra.gmra.mxu3 %v1546_v47 }
 0x7e6   : > { %1831 = vmatpush.bf16.msrb.mxu0 %v2697_v54 }
 0x7ea   : > { %1832 = vmatpush.bf16.msrb.mxu0 %v2696_v56 }
 0x7ee   : > { %1833 = vmatpush.bf16.msrb.mxu0 %v2695_v58 }
 0x7f2   : > { %1834 = vmatpush.bf16.msrb.mxu0 %v2694_v60 }
 0x868   : > { %v1658_v1 = vpop.f32.mrf.mxu2  ;;  %v1671_v2 = vpop.f32.mrf.mxu3 }
 0x869   : > { %v1659_v3 = vadd.f32 %v1658_v1, %v1565_v63  ;;  %v1672_v4 = vadd.f32 %v1671_v2, %v1566_v0 }
 0x86b   : > { %v1675_v5 = vmul.f32 %v1659_v3, %v1659_v3  ;;  %v1676_v6 = vmul.f32 %v1672_v4, %v1672_v4 }
 0x86d   : > { %v1677_v7 = vmul.f32 %v1675_v5, %v1659_v3  ;;  %v1678_v8 = vmul.f32 %v1676_v6, %v1672_v4 }
 0x86f   : > { %v1679_v9 = vmul.f32 0.044715, %v1677_v7  ;;  %v1680_v10 = vmul.f32 0.044715, %v1678_v8 }
 0x870   : > { %v1660_v11 = vpop.f32.mrf.mxu2  ;;  %v1673_v12 = vpop.f32.mrf.mxu3 }
 0x871   : > { %v1681_v13 = vadd.f32 %v1679_v9, %v1659_v3  ;;  %v1682_v14 = vadd.f32 %v1680_v10, %v1672_v4 }
 0x873   : > { %v1683_v15 = vmul.f32 0.7978846, %v1681_v13  ;;  %v1684_v16 = vmul.f32 0.7978846, %v1682_v14 }
 0x875   : > { %2886 = vtanh.f32 %v1683_v15 }
 0x876   : > { %2888 = vtanh.f32 %v1684_v16 }
 0x87b   : > { %v2887_v17 = vpop.eup %2886 }
 0x87c   : > { %v2889_v18 = vpop.eup %2888  ;;  %v1687_v20 = vadd.f32 1.0, %v2887_v17 }
 0x87d   : > { %v1688_v21 = vadd.f32 1.0, %v2889_v18 }
 0x87e   : > { %v1689_v22 = vmul.f32 0.5, %v1687_v20 }
 0x87f   : > { %v1690_v23 = vmul.f32 0.5, %v1688_v21 }
 0x880   : > { %v1691_v24 = vmul.f32 %v1689_v22, %v1659_v3 }
 0x881   : > { %v1692_v26 = vmul.f32 %v1690_v23, %v1672_v4 }
 0x882   : > { %v1693_v27 = vpack.c.bf16 %v1691_v24, %v1691_v24 }
 0x883   : > { %v1694_v28 = vpack.c.bf16 %v1692_v26, %v1692_v26 }
 0x884   : > { %1835 = vmatmul.bf16.vlgmr.msrb.gmra.mxu0 %v1693_v27 }
 0x885   : > { %1848 = vmatmul.bf16.vlgmr.msra.gmra.mxu1 %v1694_v28 }
 0x901   : > { %v1836_v30 = vpop.f32.mrf.mxu0 }
 0x902   : > { %v1837_v31 = vadd.f32 %v2863_v29, %v1836_v30  ;;  %v1849_v32 = vpop.f32.mrf.mxu1 }
 0x904   : > { %v1850_v33 = vadd.f32 %v1849_v32, %v1837_v31 }
 0x906   : > { %v1853_v34 = vadd.f32 %v1850_v33, %v3633_v45 }
 0x908   : > { %1856 = vadd.xlane.f32.xlu1 %v1853_v34 }
 0x909   : > { %v1838_v35 = vpop.f32.mrf.mxu0 }
 0x90a   : > { %v1851_v36 = vpop.f32.mrf.mxu1 }
 0x97b   : > { %v1857_v19 = vpop.xlane.xlu1 %1856 }
 0x97c   : > { %v1858_v37 = vmul.f32 %v1857_v19, %v3584_v46 }
 0x97e   : > { %v1859_v38 = vsub.f32 %v1853_v34, %v1858_v37 }
 0x980   : > { %v1860_v39 = vmul.f32 %v1859_v38, %v1859_v38 }
 0x982   : > { %1861 = vadd.xlane.f32.xlu2 %v1860_v39 }
 0x9f5   : > { %v1862_v40 = vpop.xlane.xlu2 %1861 }
 0x9f6   : > { %v1863_v41 = vmul.f32 %v1862_v40, %v3584_v46  ;;  %v2865_v46 = vld [vmem:[%s910_s8] ss:$0 sm:$0xff] }
 0x9f8   : > { %v1864_v42 = vadd.f32 1e-05, %v1863_v41 }
 0x9fa   : > { %2890 = vrsqrt.f32 %v1864_v42  ;;  %vm1871_vm14 = vweird.f32 %v1864_v42 }
 0xa00   : > { %v2891_v43 = vpop.eup %2890 }
 0xa01   : > { %v1866_v44 = vmul.f32 %v2891_v43, %v1864_v42  ;;  %vm1872_vm13 = vweird.f32 %v2891_v43 }
 0xa02   : > { %vm1873_vm15 = vmor %vm1871_vm14, %vm1872_vm13 }
 0xa03   : > { %v1867_v25 = vmul.f32 %v2891_v43, %v1866_v44 }
 0xa05   : > { %v1868_v45 = vmul.f32 0.5, %v1867_v25 }
 0xa07   : > { %v1869_v47 = vsub.f32 1.5, %v1868_v45 }
 0xa09   : > { %v1870_v48 = vmul.f32 %v2891_v43, %v1869_v47 }
 0xa0b   : > { %v1874_v49 = vsel %vm1873_vm15, %v2891_v43, %v1870_v48 }
 0xa0c   : > { %v1875_v51 = vmul.f32 %v1874_v49, %v1859_v38 }
 0xa0e   : > { %v1879_v52 = vmul.f32 %v2864_v50, %v1875_v51  ;;  %1888 = sbr.rel (%p2576_p10) target bundleno = 2882 (0xb42), region = 120 }
 0xa10   : > { %v1883_v53 = vadd.f32 %v2865_v46, %v1879_v52 }
 0xa12   : > { %1884 = vst [vmem:[#allocation2] sm:$0xff] %v1883_v53 }
 0xa13   : > { %v2717_v54 = vld [vmem:[%s3886_s23 + $0x38] sm:$0xff]  ;;  %v2716_v55 = vld [vmem:[%s3887_s12 + $0x30] sm:$0xff]  ;;  %v2715_v58 = vld [vmem:[%s3887_s12 + $0x28] sm:$0xff]  ;;  %v1889_v3 = vpack.c.bf16 %v1883_v53, %v1883_v53 }
 0xa14   : > { %1955 = vmatpush.bf16.msra.mxu0 %v2717_v54  ;;  %v2725_v56 = vld [vmem:[%s3888_s29 + $0x38] sm:$0xff]  ;;  %v2724_v57 = vld [vmem:[%s3888_s29 + $0x30] sm:$0xff]  ;;  %v2723_v59 = vld [vmem:[%s3888_s29 + $0x28] sm:$0xff] }
 0xa15   : > { %2035 = vmatpush.bf16.msra.mxu1 %v2725_v56  ;;  %v2714_v60 = vld [vmem:[%s3887_s12 + $0x20] sm:$0xff]  ;;  %v2713_v62 = vld [vmem:[%s3887_s12 + $0x18] sm:$0xff]  ;;  %v2712_v0 = vld [vmem:[%s3887_s12 + $0x10] sm:$0xff] }
 0xa16   : > { %v2722_v61 = vld [vmem:[%s3888_s29 + $0x20] sm:$0xff]  ;;  %v2721_v63 = vld [vmem:[%s3888_s29 + $0x18] sm:$0xff]  ;;  %v2711_v1 = vld [vmem:[%s3887_s12 + $0x8] sm:$0xff] }
 0xa17   : > { %v2710_v2 = vld [vmem:[%s3887_s12] sm:$0xff]  ;;  %v2720_v4 = vld [vmem:[%s3888_s29 + $0x10] sm:$0xff]  ;;  %v2719_v5 = vld [vmem:[%s3888_s29 + $0x8] sm:$0xff] }
 0xa18   : > { %1956 = vmatpush.bf16.msra.mxu0 %v2716_v55  ;;  %v2718_v6 = vld [vmem:[%s3888_s29] sm:$0xff] }
 0xa19   : > { %2036 = vmatpush.bf16.msra.mxu1 %v2724_v57  ;;  %v1906_v7 = vld [vmem:[%s3889_s25] sm:$0x1] }
 0xa1a   : > { %v1986_v13 = vld [vmem:[%s3890_s4] sm:$0x1] }
 0xa1c   : > { %1957 = vmatpush.bf16.msra.mxu0 %v2715_v58 }
 0xa1d   : > { %2037 = vmatpush.bf16.msra.mxu1 %v2723_v59 }
 0xa20   : > { %1958 = vmatpush.bf16.msra.mxu0 %v2714_v60 }
 0xa21   : > { %2038 = vmatpush.bf16.msra.mxu1 %v2722_v61 }
 0xa24   : > { %1959 = vmatpush.bf16.msra.mxu0 %v2713_v62 }
 0xa25   : > { %2039 = vmatpush.bf16.msra.mxu1 %v2721_v63 }
 0xa28   : > { %1960 = vmatpush.bf16.msra.mxu0 %v2712_v0 }
 0xa29   : > { %2040 = vmatpush.bf16.msra.mxu1 %v2720_v4 }
 0xa2c   : > { %1961 = vmatpush.bf16.msra.mxu0 %v2711_v1 }
 0xa2d   : > { %2041 = vmatpush.bf16.msra.mxu1 %v2719_v5 }
 0xa30   : > { %1962 = vmatpush.bf16.msra.mxu0 %v2710_v2 }
 0xa31   : > { %2042 = vmatpush.bf16.msra.mxu1 %v2718_v6 }
 0xa33   : > { %1963 = vmatmul.bf16.vlgmr.msra.gmra.mxu0 %v1889_v3 }
 0xab0   : > { %v1964_v8 = vpop.f32.mrf.mxu0 }
 0xab1   : > { %v1965_v9 = vadd.f32 %v1964_v8, %v1906_v7 }
 0xab3   : > { %2892 = vtanh.f32 %v1965_v9 }
 0xab8   : > { %v1966_v10 = vpop.f32.mrf.mxu0 }
 0xab9   : > { %v2893_v11 = vpop.eup %2892 }
 0xaba   : > { %v1969_v12 = vpack.c.bf16 %v2893_v11, %v2893_v11 }
 0xabc   : > { %2043 = vmatmul.bf16.vlgmr.msra.gmra.mxu1 %v1969_v12 }
 0xb39   : > { %v2044_v14 = vpop.f32.mrf.mxu1 }
 0xb3a   : > { %v2045_v15 = vadd.f32 %v2044_v14, %v1986_v13 }
 0xb3c   : > { %2048 = vst [vmem:[%s3455_s15] sm:$0x1] %v2045_v15 }
 0xb41   : > { %v2046_v16 = vpop.f32.mrf.mxu1 }
 0xb42 PF: > { %s3891_s16 = sld [smem:[#allocation17_spill]]  ;;  %s2060_s7 = sshll.u32 %s3455_s15, 4  ;;  %s2061_s7 = int_to_ptr.vmem [resolvable:$true] %s2060_s7 }
 0xb43   : > { %s3892_s5 = sld [smem:[#allocation47_spill]]  ;;  %s3894_s28 = sand.u32 1, %s3074_s22  }
 0xb44   : > { %s2050_s9 = scalar_lea.sflag [#allocation5], %s3894_s28 }
 0xb49   : > { %s2058_s10 = scalar_lea.hbm %s3892_s5, %s3891_s16  ;;  %s3004_s21 = scalar_lea.hbm %s3892_s5, 2 }
 0xb4a   : > { %s2062_s13 = sshll.u32 %s2058_s10, 4  ;;  %s2063_s13 = int_to_ptr.hbm [resolvable:$true] %s2062_s13 }
 0xb4b   : > { %s2998_s30 = sshra.s32 %s2063_s13, 4  ;;  %s2999_s30 = int_to_ptr.hbm [resolvable:$true] %s2998_s30 }
 0xb4c   : > { %s3000_s1 = scalar_lea.hbm %s2999_s30, 1  ;;  %p3005_p1 = scmp.lt.s32.totalorder %s2999_s30, %s3892_s5 }
 0xb4d   : > { %p3001_p11 = scmp.ne.s32.totalorder %s2999_s30, %s3000_s1  ;;  %p3006_p4 = scmp.lt.s32.totalorder %s3004_s21, %s3000_s1 }
 0xb4f   : > { %p3002_p13 = pnand %p3001_p11, %p3320_p12  ;;  %p3007_p3 = por %p3006_p4, %p3005_p1 }
 0xb51   : > { %p3003_p0 = pneg %p3002_p13 }
 0xb53   : > { %p3008_p5 = pnand %p3007_p3, %p3003_p0 }
 0xb55   : > { %3011 = shalt.err (!%p3008_p5)
}
 0xb56   : > { %2736 = dma.vmem_to_hbm [thread:$0]  (%p3320_p12), %s2061_s7, 16, %s2063_s13, %s2050_s9  }
 0xb57 PF: > { %s3895_s15 = sld [smem:[#allocation20_spill]] }
 0xb58   : > { %s3896_s23 = sld [smem:[#allocation13_spill]] }
 0xb5d   : > { %p2753_p6 = scmp.ge.s32.totalorder %s3895_s15, 2 }
 0xb5e   : > { %s2074_s2 = sand.u32 1, %s3896_s23  }
 0xb5f   : > { %p2749_p7 = pnand %p2753_p6, %p3330_p2  ;;  %s2075_s17 = scalar_lea.sflag [#allocation5], %s2074_s2 }
 0xb61   : > { %p2750_p9 = pneg %p2749_p7 }
 0xb63   : > { %3065 = dma.done.wait (%p2750_p9), %s2075_s17, 16  }
 0xb64   : > { %3067 = vsyncadd (%p2750_p9), %s2075_s17, 4294967280  ;;  %s39_s4 = sadd.s32 1, %s3895_s15   ;;  %s3898_s27 = sld [smem:[#allocation14_spill]] }
 0xb65   : > { %p36_p8 = scmp.ge.s32.totalorder %s39_s4, 6   ;;  %s3899_s23 = sld [smem:[#allocation24_spill]] }
 0xb66   : > { %s3900_s24 = sld [smem:[#allocation15_spill]]  ;;  %s3907_s1 = smov %s3074_s22 }
 0xb67   : > { %s3901_s2 = sld [smem:[#allocation16_spill]] }
 0xb68   : > { %s3902_s25 = sld [smem:[#allocation23_spill]] }
 0xb69   : > { %s3903_s3 = sld [smem:[#allocation18_spill]] }
 0xb6a   : > { %s3904_s26 = sld [smem:[#allocation19_spill]]  ;;  %s3908_s22 = smov %s3898_s27 }
 0xb6b   : > { %s3905_s8 = sld [smem:[#allocation21_spill]] }
 0xb6c   : > { %s3906_s28 = sld [smem:[#allocation22_spill]] }
 0xb6d   :  { %38 = sbr.rel (!%p36_p8) target bundleno = 33 (0x21), region = 210 }
 0xb71   : > { %s3909_s27 = smov %s3905_s8 }
 0xb72   :  { %2080 = vsyncpa [#allocation4], 1 }
 0xb73   :  { %2082 = vsyncpa [#allocation4 + $0x1], 1 }
 0xb74   :  { %2083 = vsyncpa [#allocation7], 1 }
 0xb75   :  { %2085 = vsyncpa [#allocation7 + $0x1], 1 }
 0xb76   :  { %2086 = vsyncpa [#allocation5], 1 }
 0xb77   :  { %2088 = vsyncpa [#allocation5 + $0x1], 1 }

</bundles_post_ra>
